<compile_context>
chip_gen: v7x
topology: tpu7x:2x2x1
jax: 0.10.0
libtpu: 0.0.40
codegen_flags: <defaults>
</compile_context>

<pallas_src>
import numpy as np

import jax
import jax.numpy as jnp
from jax.experimental import pallas as pl
from jax.experimental.pallas import tpu as pltpu

_BN_EPS = 1e-5


def _pick_vmem_limit_bytes():
    """Size the scoped-VMEM limit to the chip instead of hardcoding 32 MiB."""
    try:
        cap = pltpu.get_tpu_info().vmem_capacity_bytes
        return int(min(cap * 3 // 4, 100 * 1024 * 1024))
    except Exception:
        return 32 * 1024 * 1024


def _banded_conv_weights(wt_hwio, W):
    """Fold the 3 dx taps + width-1 zero padding of a 3x3 conv into banded matrices.

    wt_hwio : (3, 3, Cin, Cout) conv weights, HWIO.
    returns : (3, W*Cin, W*Cout) bf16, one banded matrix per kernel row dy, with
              M[dy, wp*Cin + ci, w*Cout + co] = wt[dy, wp - w + 1, ci, co]
              and zero outside the band (this zero band IS the W zero-padding).
    """
    kh, kw, cin, cout = wt_hwio.shape
    sel = np.zeros((kw, W, W), np.float32)            # sel[dx, wp, w]
    for dx in range(kw):
        for w in range(W):
            wp = w + dx - 1                           # padding = 1
            if 0 <= wp < W:
                sel[dx, wp, w] = 1.0
    m = jnp.einsum("xpw,dxio->dpiwo", jnp.asarray(sel, wt_hwio.dtype), wt_hwio)
    return m.reshape(kh, W * cin, W * cout).astype(jnp.bfloat16)


def double_conv_nhwc(x_nhwc, params):
    """Whole DoubleConv on an NHWC tensor in one fused Pallas call."""
    B, H, W, cin = x_nhwc.shape
    mid = params["w1"].shape[-1]
    cout = params["w2"].shape[-1]
    rows = B * H
    inv_n = 1.0 / float(B * H * W)                    # BN reduces over N*H*W

    # Banded conv weights (dx taps + W padding folded in), bf16 for the MXU.
    m1 = _banded_conv_weights(params["w1"], W)        # (3, W*cin, W*mid)
    m2 = _banded_conv_weights(params["w2"], W)        # (3, W*mid, W*cout)

    # BN affine params pre-tiled to the lane layout (lane index = w*C + c).
    g1 = jnp.tile(params["gamma1"].reshape(1, mid).astype(jnp.float32), (1, W))
    b1 = jnp.tile(params["beta1"].reshape(1, mid).astype(jnp.float32), (1, W))
    g2 = jnp.tile(params["gamma2"].reshape(1, cout).astype(jnp.float32), (1, W))
    b2 = jnp.tile(params["beta2"].reshape(1, cout).astype(jnp.float32), (1, W))

    # 0/1 matrices: reduce lanes -> channels (rs) and broadcast channels ->
    # lanes (rb), as tiny MXU matmuls instead of lane-splitting reshapes.
    rs1 = jnp.tile(jnp.eye(mid, dtype=jnp.float32), (W, 1))      # (W*mid, mid)
    rb1 = jnp.tile(jnp.eye(mid, dtype=jnp.float32), (1, W))      # (mid, W*mid)
    rs2 = jnp.tile(jnp.eye(cout, dtype=jnp.float32), (W, 1))     # (W*cout, cout)
    rb2 = jnp.tile(jnp.eye(cout, dtype=jnp.float32), (1, W))     # (cout, W*cout)
    # Conv biases are intentionally NOT passed: they cancel exactly under
    # training-mode BatchNorm's mean subtraction.

    def kernel(x_ref, m1_ref, g1_ref, b1_ref, rs1_ref, rb1_ref,
               m2_ref, g2_ref, b2_ref, rs2_ref, rb2_ref,
               o_ref, xp1_scr, xp2_scr):

        def conv_bn_relu(xp_scr, m_ref, g_ref, b_ref, rs_ref, rb_ref):
            # 3x3 conv = 3 MXU matmuls (one per kernel row dy) against banded
            # weights.  Operands bf16, accumulation f32.
            k = xp_scr.shape[2]                                    # W*Cin_blk
            y = jnp.dot(xp_scr[:, 0:H, :].reshape(rows, k), m_ref[0],
                        preferred_element_type=jnp.float32)
            for dy in (1, 2):
                y = y + jnp.dot(xp_scr[:, dy:dy + H, :].reshape(rows, k),
                                m_ref[dy], preferred_element_type=jnp.float32)

            # BatchNorm2d (training/batch stats), two-pass so var >= 0 always.
            lane_sum = jnp.sum(y, axis=0, keepdims=True)           # (1, W*C)
            ch_mean = jnp.dot(lane_sum, rs_ref[...],
                              preferred_element_type=jnp.float32) * inv_n
            mean_l = jnp.dot(ch_mean, rb_ref[...],
                             preferred_element_type=jnp.float32)   # (1, W*C)
            yc = y - mean_l
            lane_ssq = jnp.sum(yc * yc, axis=0, keepdims=True)
            ch_var = jnp.dot(lane_ssq, rs_ref[...],
                             preferred_element_type=jnp.float32) * inv_n
            var_l = jnp.dot(ch_var, rb_ref[...],
                            preferred_element_type=jnp.float32)    # (1, W*C)
            scale_l = g_ref[...] * jax.lax.rsqrt(var_l + _BN_EPS)
            return jnp.maximum(yc * scale_l + b_ref[...], 0.0)     # (rows, W*C)

        # ---- block 1: halo-only zero pad (rows 0 and H+1), interior = input.
        zrow1 = jnp.zeros((B, 1, W * cin), jnp.bfloat16)
        xp1_scr[:, 0:1, :] = zrow1
        xp1_scr[:, H + 1:H + 2, :] = zrow1
        xp1_scr[:, 1:H + 1, :] = x_ref[...]
        h1 = conv_bn_relu(xp1_scr, m1_ref, g1_ref, b1_ref, rs1_ref, rb1_ref)

        # ---- block 2: write block-1's result straight into xp2's interior.
        zrow2 = jnp.zeros((B, 1, W * mid), jnp.bfloat16)
        xp2_scr[:, 0:1, :] = zrow2
        xp2_scr[:, H + 1:H + 2, :] = zrow2
        xp2_scr[:, 1:H + 1, :] = h1.astype(jnp.bfloat16).reshape(B, H, W * mid)
        h2 = conv_bn_relu(xp2_scr, m2_ref, g2_ref, b2_ref, rs2_ref, rb2_ref)

        # Lane-dense output store: (B*H, W*cout) = (32, 128) at demo shapes.
        o_ref[...] = h2

    vmem = pl.BlockSpec(memory_space=pltpu.MemorySpace.VMEM)
    out2d = pl.pallas_call(
        kernel,
        out_shape=jax.ShapeDtypeStruct((rows, W * cout), jnp.float32),
        in_specs=[vmem] * 11,
        out_specs=vmem,
        scratch_shapes=[
            pltpu.VMEM((B, H + 2, W * cin), jnp.bfloat16),   # H-padded act 1
            pltpu.VMEM((B, H + 2, W * mid), jnp.bfloat16),   # H-padded act 2
        ],
        compiler_params=pltpu.CompilerParams(
            vmem_limit_bytes=_pick_vmem_limit_bytes()),
    )(x_nhwc.reshape(B, H, W * cin).astype(jnp.bfloat16),
      m1, g1, b1, rs1, rb1, m2, g2, b2, rs2, rb2)
    return out2d.reshape(B, H, W, cout)


def init_double_conv_params(key, in_channels, out_channels, mid_channels=None):
    """Deterministic synthetic params matching the PyTorch module's shapes."""
    if not mid_channels:
        mid_channels = out_channels
    k1, k2, k3, k4 = jax.random.split(key, 4)
    return {
        # Conv1: Conv2d(in, mid, 3) weights in HWIO layout + bias.
        "w1": jax.random.normal(k1, (3, 3, in_channels, mid_channels), jnp.float32) * 0.2,
        "b1": jax.random.normal(k2, (mid_channels,), jnp.float32) * 0.1,
        # BatchNorm2d(mid): PyTorch init weight=1, bias=0.
        "gamma1": jnp.ones((mid_channels,), jnp.float32),
        "beta1": jnp.zeros((mid_channels,), jnp.float32),
        # Conv2: Conv2d(mid, out, 3) weights + bias.
        "w2": jax.random.normal(k3, (3, 3, mid_channels, out_channels), jnp.float32) * 0.2,
        "b2": jax.random.normal(k4, (out_channels,), jnp.float32) * 0.1,
        # BatchNorm2d(out).
        "gamma2": jnp.ones((out_channels,), jnp.float32),
        "beta2": jnp.zeros((out_channels,), jnp.float32),
    }


@jax.jit
def double_conv_forward(x_nchw, params):
    """DoubleConv forward. Input/output are NCHW to match PyTorch."""
    x = jnp.transpose(x_nchw, (0, 2, 3, 1))   # NCHW -> NHWC
    y = double_conv_nhwc(x, params)
    return jnp.transpose(y, (0, 3, 1, 2))     # NHWC -> NCHW


def _reference_double_conv(x_nchw, params):
    """Pure-JAX f32 reference (lax.conv, WITH conv bias) for a sanity check."""
    def block(x, w, b, gamma, beta):
        y = jax.lax.conv_general_dilated(
            x, w, window_strides=(1, 1), padding=((1, 1), (1, 1)),
            dimension_numbers=("NCHW", "HWIO", "NCHW"))
        y = y + b[None, :, None, None]
        mean = jnp.mean(y, axis=(0, 2, 3), keepdims=True)
        var = jnp.mean((y - mean) ** 2, axis=(0, 2, 3), keepdims=True)
        h = (y - mean) / jnp.sqrt(var + _BN_EPS)
        h = h * gamma[None, :, None, None] + beta[None, :, None, None]
        return jnp.maximum(h, 0.0)

    x = block(x_nchw, params["w1"], params["b1"], params["gamma1"], params["beta1"])
    x = block(x, params["w2"], params["b2"], params["gamma2"], params["beta2"])
    return x


if __name__ == "__main__":
    in_channels, out_channels = 4, 8
    B, H, W = 2, 16, 16

    key = jax.random.PRNGKey(0)
    kx, kp = jax.random.split(key)
    x = jax.random.normal(kx, (B, in_channels, H, W), jnp.float32)
    params = init_double_conv_params(kp, in_channels, out_channels)

    out = jax.block_until_ready(double_conv_forward(x, params))
    ref = _reference_double_conv(x, params)

    assert out.shape == (B, out_channels, H, W), out.shape
    # Tolerance sized for bf16 MXU operands / bf16 activation scratch in the
    # kernel vs. the all-f32 reference.
    assert jnp.allclose(out, ref, atol=5e-2, rtol=5e-2), float(
        jnp.max(jnp.abs(out - ref)))

    print("KERNEL_OK")
</pallas_src>

<mosaic_0001>
module attributes {stable_mosaic.version = 11 : i64} {
  func.func @kernel(%arg0: memref<2x16x64xbf16, #tpu.memory_space<vmem>>, %arg1: memref<3x64x128xbf16, #tpu.memory_space<vmem>>, %arg2: memref<1x128xf32, #tpu.memory_space<vmem>>, %arg3: memref<1x128xf32, #tpu.memory_space<vmem>>, %arg4: memref<128x8xf32, #tpu.memory_space<vmem>>, %arg5: memref<8x128xf32, #tpu.memory_space<vmem>>, %arg6: memref<3x128x128xbf16, #tpu.memory_space<vmem>>, %arg7: memref<1x128xf32, #tpu.memory_space<vmem>>, %arg8: memref<1x128xf32, #tpu.memory_space<vmem>>, %arg9: memref<128x8xf32, #tpu.memory_space<vmem>>, %arg10: memref<8x128xf32, #tpu.memory_space<vmem>>, %arg11: memref<32x128xf32, #tpu.memory_space<vmem>>, %arg12: memref<2x18x64xbf16, #tpu.memory_space<vmem>>, %arg13: memref<2x18x128xbf16, #tpu.memory_space<vmem>>) attributes {dimension_semantics = [], scalar_prefetch = 0 : i64, scratch_operands = 2 : i64, tpu.core_type = #tpu.core_type<tc>} {
    %cst = arith.constant 0.000000e+00 : bf16
    %0 = vector.broadcast %cst : bf16 to vector<2x1x64xbf16>
    %c0 = arith.constant 0 : index
    %c0_0 = arith.constant 0 : index
    %c0_1 = arith.constant 0 : index
    %1 = vector.load %arg12[%c0, %c0_0, %c0_1] : memref<2x18x64xbf16, #tpu.memory_space<vmem>>, vector<2x1x64xbf16>
    tpu.vector_store %arg12[%c0, %c0_0, %c0_1], %0 {strides = array<i32>} : memref<2x18x64xbf16, #tpu.memory_space<vmem>>, vector<2x1x64xbf16>,
    %c0_2 = arith.constant 0 : index
    %c17 = arith.constant 17 : index
    %c0_3 = arith.constant 0 : index
    %2 = vector.load %arg12[%c0_2, %c17, %c0_3] : memref<2x18x64xbf16, #tpu.memory_space<vmem>>, vector<2x1x64xbf16>
    tpu.vector_store %arg12[%c0_2, %c17, %c0_3], %0 {strides = array<i32>} : memref<2x18x64xbf16, #tpu.memory_space<vmem>>, vector<2x1x64xbf16>,
    %c0_4 = arith.constant 0 : index
    %c0_5 = arith.constant 0 : index
    %c0_6 = arith.constant 0 : index
    %3 = vector.load %arg0[%c0_4, %c0_5, %c0_6] : memref<2x16x64xbf16, #tpu.memory_space<vmem>>, vector<2x16x64xbf16>
    %c0_7 = arith.constant 0 : index
    %c1 = arith.constant 1 : index
    %c0_8 = arith.constant 0 : index
    %4 = vector.load %arg12[%c0_7, %c1, %c0_8] : memref<2x18x64xbf16, #tpu.memory_space<vmem>>, vector<2x16x64xbf16>
    tpu.vector_store %arg12[%c0_7, %c1, %c0_8], %3 {strides = array<i32>} : memref<2x18x64xbf16, #tpu.memory_space<vmem>>, vector<2x16x64xbf16>,
    %c0_9 = arith.constant 0 : index
    %c0_10 = arith.constant 0 : index
    %c0_11 = arith.constant 0 : index
    %5 = vector.load %arg12[%c0_9, %c0_10, %c0_11] : memref<2x18x64xbf16, #tpu.memory_space<vmem>>, vector<2x16x64xbf16>
    %6 = vector.shape_cast %5 : vector<2x16x64xbf16> to vector<32x64xbf16>
    %c0_12 = arith.constant 0 : index
    %c0_13 = arith.constant 0 : index
    %c0_14 = arith.constant 0 : index
    %7 = vector.load %arg1[%c0_12, %c0_13, %c0_14] : memref<3x64x128xbf16, #tpu.memory_space<vmem>>, vector<1x64x128xbf16>
    %8 = vector.shape_cast %7 : vector<1x64x128xbf16> to vector<64x128xbf16>
    %cst_15 = arith.constant dense<0.000000e+00> : vector<32x128xf32>
    %9 = tpu.matmul %6, %8, %cst_15 {dimension_numbers = #tpu.dot_dimension_numbers<[1], [0], [0], [1], [0, 0, 1, 1], [], []>} : vector<32x64xbf16>, vector<64x128xbf16>, vector<32x128xf32> -> vector<32x128xf32>
    %c0_16 = arith.constant 0 : index
    %c1_17 = arith.constant 1 : index
    %c0_18 = arith.constant 0 : index
    %10 = vector.load %arg12[%c0_16, %c1_17, %c0_18] : memref<2x18x64xbf16, #tpu.memory_space<vmem>>, vector<2x16x64xbf16>
    %11 = vector.shape_cast %10 : vector<2x16x64xbf16> to vector<32x64xbf16>
    %c1_19 = arith.constant 1 : index
    %c0_20 = arith.constant 0 : index
    %c0_21 = arith.constant 0 : index
    %12 = vector.load %arg1[%c1_19, %c0_20, %c0_21] : memref<3x64x128xbf16, #tpu.memory_space<vmem>>, vector<1x64x128xbf16>
    %13 = vector.shape_cast %12 : vector<1x64x128xbf16> to vector<64x128xbf16>
    %cst_22 = arith.constant dense<0.000000e+00> : vector<32x128xf32>
    %14 = tpu.matmul %11, %13, %cst_22 {dimension_numbers = #tpu.dot_dimension_numbers<[1], [0], [0], [1], [0, 0, 1, 1], [], []>} : vector<32x64xbf16>, vector<64x128xbf16>, vector<32x128xf32> -> vector<32x128xf32>
    %15 = arith.addf %9, %14 : vector<32x128xf32>
    %c0_23 = arith.constant 0 : index
    %c2 = arith.constant 2 : index
    %c0_24 = arith.constant 0 : index
    %16 = vector.load %arg12[%c0_23, %c2, %c0_24] : memref<2x18x64xbf16, #tpu.memory_space<vmem>>, vector<2x16x64xbf16>
    %17 = vector.shape_cast %16 : vector<2x16x64xbf16> to vector<32x64xbf16>
    %c2_25 = arith.constant 2 : index
    %c0_26 = arith.constant 0 : index
    %c0_27 = arith.constant 0 : index
    %18 = vector.load %arg1[%c2_25, %c0_26, %c0_27] : memref<3x64x128xbf16, #tpu.memory_space<vmem>>, vector<1x64x128xbf16>
    %19 = vector.shape_cast %18 : vector<1x64x128xbf16> to vector<64x128xbf16>
    %cst_28 = arith.constant dense<0.000000e+00> : vector<32x128xf32>
    %20 = tpu.matmul %17, %19, %cst_28 {dimension_numbers = #tpu.dot_dimension_numbers<[1], [0], [0], [1], [0, 0, 1, 1], [], []>} : vector<32x64xbf16>, vector<64x128xbf16>, vector<32x128xf32> -> vector<32x128xf32>
    %21 = arith.addf %15, %20 : vector<32x128xf32>
    %cst_29 = arith.constant dense<0.000000e+00> : vector<128xf32>
    %22 = vector.multi_reduction <add>, %21, %cst_29 [0] : vector<32x128xf32> to vector<128xf32>
    %23 = vector.shape_cast %22 : vector<128xf32> to vector<1x128xf32>
    %c0_30 = arith.constant 0 : index
    %c0_31 = arith.constant 0 : index
    %24 = vector.load %arg4[%c0_30, %c0_31] : memref<128x8xf32, #tpu.memory_space<vmem>>, vector<128x8xf32>
    %cst_32 = arith.constant dense<0.000000e+00> : vector<1x8xf32>
    %25 = tpu.matmul %23, %24, %cst_32 {dimension_numbers = #tpu.dot_dimension_numbers<[1], [0], [0], [1], [0, 0, 1, 1], [], []>} : vector<1x128xf32>, vector<128x8xf32>, vector<1x8xf32> -> vector<1x8xf32>
    %cst_33 = arith.constant 0.001953125 : f32
    %26 = vector.broadcast %cst_33 : f32 to vector<1x8xf32>
    %27 = arith.mulf %25, %26 : vector<1x8xf32>
    %c0_34 = arith.constant 0 : index
    %c0_35 = arith.constant 0 : index
    %28 = vector.load %arg5[%c0_34, %c0_35] : memref<8x128xf32, #tpu.memory_space<vmem>>, vector<8x128xf32>
    %cst_36 = arith.constant dense<0.000000e+00> : vector<1x128xf32>
    %29 = tpu.matmul %27, %28, %cst_36 {dimension_numbers = #tpu.dot_dimension_numbers<[1], [0], [0], [1], [0, 0, 1, 1], [], []>} : vector<1x8xf32>, vector<8x128xf32>, vector<1x128xf32> -> vector<1x128xf32>
    %30 = vector.broadcast %29 : vector<1x128xf32> to vector<32x128xf32>
    %31 = arith.subf %21, %30 : vector<32x128xf32>
    %32 = arith.mulf %31, %31 : vector<32x128xf32>
    %cst_37 = arith.constant dense<0.000000e+00> : vector<128xf32>
    %33 = vector.multi_reduction <add>, %32, %cst_37 [0] : vector<32x128xf32> to vector<128xf32>
    %34 = vector.shape_cast %33 : vector<128xf32> to vector<1x128xf32>
    %c0_38 = arith.constant 0 : index
    %c0_39 = arith.constant 0 : index
    %35 = vector.load %arg4[%c0_38, %c0_39] : memref<128x8xf32, #tpu.memory_space<vmem>>, vector<128x8xf32>
    %cst_40 = arith.constant dense<0.000000e+00> : vector<1x8xf32>
    %36 = tpu.matmul %34, %35, %cst_40 {dimension_numbers = #tpu.dot_dimension_numbers<[1], [0], [0], [1], [0, 0, 1, 1], [], []>} : vector<1x128xf32>, vector<128x8xf32>, vector<1x8xf32> -> vector<1x8xf32>
    %cst_41 = arith.constant 0.001953125 : f32
    %37 = vector.broadcast %cst_41 : f32 to vector<1x8xf32>
    %38 = arith.mulf %36, %37 : vector<1x8xf32>
    %c0_42 = arith.constant 0 : index
    %c0_43 = arith.constant 0 : index
    %39 = vector.load %arg5[%c0_42, %c0_43] : memref<8x128xf32, #tpu.memory_space<vmem>>, vector<8x128xf32>
    %cst_44 = arith.constant dense<0.000000e+00> : vector<1x128xf32>
    %40 = tpu.matmul %38, %39, %cst_44 {dimension_numbers = #tpu.dot_dimension_numbers<[1], [0], [0], [1], [0, 0, 1, 1], [], []>} : vector<1x8xf32>, vector<8x128xf32>, vector<1x128xf32> -> vector<1x128xf32>
    %c0_45 = arith.constant 0 : index
    %c0_46 = arith.constant 0 : index
    %41 = vector.load %arg2[%c0_45, %c0_46] : memref<1x128xf32, #tpu.memory_space<vmem>>, vector<1x128xf32>
    %cst_47 = arith.constant 9.99999974E-6 : f32
    %42 = vector.broadcast %cst_47 : f32 to vector<1x128xf32>
    %43 = arith.addf %40, %42 : vector<1x128xf32>
    %44 = math.rsqrt %43 : vector<1x128xf32>
    %45 = arith.mulf %41, %44 : vector<1x128xf32>
    %46 = vector.broadcast %45 : vector<1x128xf32> to vector<32x128xf32>
    %47 = arith.mulf %31, %46 : vector<32x128xf32>
    %c0_48 = arith.constant 0 : index
    %c0_49 = arith.constant 0 : index
    %48 = vector.load %arg3[%c0_48, %c0_49] : memref<1x128xf32, #tpu.memory_space<vmem>>, vector<1x128xf32>
    %49 = vector.broadcast %48 : vector<1x128xf32> to vector<32x128xf32>
    %50 = arith.addf %47, %49 : vector<32x128xf32>
    %cst_50 = arith.constant 0.000000e+00 : f32
    %51 = vector.broadcast %cst_50 : f32 to vector<32x128xf32>
    %52 = arith.maximumf %50, %51 : vector<32x128xf32>
    %cst_51 = arith.constant 0.000000e+00 : bf16
    %53 = vector.broadcast %cst_51 : bf16 to vector<2x1x128xbf16>
    %c0_52 = arith.constant 0 : index
    %c0_53 = arith.constant 0 : index
    %c0_54 = arith.constant 0 : index
    %54 = vector.load %arg13[%c0_52, %c0_53, %c0_54] : memref<2x18x128xbf16, #tpu.memory_space<vmem>>, vector<2x1x128xbf16>
    tpu.vector_store %arg13[%c0_52, %c0_53, %c0_54], %53 {strides = array<i32>} : memref<2x18x128xbf16, #tpu.memory_space<vmem>>, vector<2x1x128xbf16>,
    %c0_55 = arith.constant 0 : index
    %c17_56 = arith.constant 17 : index
    %c0_57 = arith.constant 0 : index
    %55 = vector.load %arg13[%c0_55, %c17_56, %c0_57] : memref<2x18x128xbf16, #tpu.memory_space<vmem>>, vector<2x1x128xbf16>
    tpu.vector_store %arg13[%c0_55, %c17_56, %c0_57], %53 {strides = array<i32>} : memref<2x18x128xbf16, #tpu.memory_space<vmem>>, vector<2x1x128xbf16>,
    %56 = arith.truncf %52 : vector<32x128xf32> to vector<32x128xbf16>
    %57 = vector.shape_cast %56 : vector<32x128xbf16> to vector<2x16x128xbf16>
    %c0_58 = arith.constant 0 : index
    %c1_59 = arith.constant 1 : index
    %c0_60 = arith.constant 0 : index
    %58 = vector.load %arg13[%c0_58, %c1_59, %c0_60] : memref<2x18x128xbf16, #tpu.memory_space<vmem>>, vector<2x16x128xbf16>
    tpu.vector_store %arg13[%c0_58, %c1_59, %c0_60], %57 {strides = array<i32>} : memref<2x18x128xbf16, #tpu.memory_space<vmem>>, vector<2x16x128xbf16>,
    %c0_61 = arith.constant 0 : index
    %c0_62 = arith.constant 0 : index
    %c0_63 = arith.constant 0 : index
    %59 = vector.load %arg13[%c0_61, %c0_62, %c0_63] : memref<2x18x128xbf16, #tpu.memory_space<vmem>>, vector<2x16x128xbf16>
    %60 = vector.shape_cast %59 : vector<2x16x128xbf16> to vector<32x128xbf16>
    %c0_64 = arith.constant 0 : index
    %c0_65 = arith.constant 0 : index
    %c0_66 = arith.constant 0 : index
    %61 = vector.load %arg6[%c0_64, %c0_65, %c0_66] : memref<3x128x128xbf16, #tpu.memory_space<vmem>>, vector<1x128x128xbf16>
    %62 = vector.shape_cast %61 : vector<1x128x128xbf16> to vector<128x128xbf16>
    %cst_67 = arith.constant dense<0.000000e+00> : vector<32x128xf32>
    %63 = tpu.matmul %60, %62, %cst_67 {dimension_numbers = #tpu.dot_dimension_numbers<[1], [0], [0], [1], [0, 0, 1, 1], [], []>} : vector<32x128xbf16>, vector<128x128xbf16>, vector<32x128xf32> -> vector<32x128xf32>
    %c0_68 = arith.constant 0 : index
    %c1_69 = arith.constant 1 : index
    %c0_70 = arith.constant 0 : index
    %64 = vector.load %arg13[%c0_68, %c1_69, %c0_70] : memref<2x18x128xbf16, #tpu.memory_space<vmem>>, vector<2x16x128xbf16>
    %65 = vector.shape_cast %64 : vector<2x16x128xbf16> to vector<32x128xbf16>
    %c1_71 = arith.constant 1 : index
    %c0_72 = arith.constant 0 : index
    %c0_73 = arith.constant 0 : index
    %66 = vector.load %arg6[%c1_71, %c0_72, %c0_73] : memref<3x128x128xbf16, #tpu.memory_space<vmem>>, vector<1x128x128xbf16>
    %67 = vector.shape_cast %66 : vector<1x128x128xbf16> to vector<128x128xbf16>
    %cst_74 = arith.constant dense<0.000000e+00> : vector<32x128xf32>
    %68 = tpu.matmul %65, %67, %cst_74 {dimension_numbers = #tpu.dot_dimension_numbers<[1], [0], [0], [1], [0, 0, 1, 1], [], []>} : vector<32x128xbf16>, vector<128x128xbf16>, vector<32x128xf32> -> vector<32x128xf32>
    %69 = arith.addf %63, %68 : vector<32x128xf32>
    %c0_75 = arith.constant 0 : index
    %c2_76 = arith.constant 2 : index
    %c0_77 = arith.constant 0 : index
    %70 = vector.load %arg13[%c0_75, %c2_76, %c0_77] : memref<2x18x128xbf16, #tpu.memory_space<vmem>>, vector<2x16x128xbf16>
    %71 = vector.shape_cast %70 : vector<2x16x128xbf16> to vector<32x128xbf16>
    %c2_78 = arith.constant 2 : index
    %c0_79 = arith.constant 0 : index
    %c0_80 = arith.constant 0 : index
    %72 = vector.load %arg6[%c2_78, %c0_79, %c0_80] : memref<3x128x128xbf16, #tpu.memory_space<vmem>>, vector<1x128x128xbf16>
    %73 = vector.shape_cast %72 : vector<1x128x128xbf16> to vector<128x128xbf16>
    %cst_81 = arith.constant dense<0.000000e+00> : vector<32x128xf32>
    %74 = tpu.matmul %71, %73, %cst_81 {dimension_numbers = #tpu.dot_dimension_numbers<[1], [0], [0], [1], [0, 0, 1, 1], [], []>} : vector<32x128xbf16>, vector<128x128xbf16>, vector<32x128xf32> -> vector<32x128xf32>
    %75 = arith.addf %69, %74 : vector<32x128xf32>
    %cst_82 = arith.constant dense<0.000000e+00> : vector<128xf32>
    %76 = vector.multi_reduction <add>, %75, %cst_82 [0] : vector<32x128xf32> to vector<128xf32>
    %77 = vector.shape_cast %76 : vector<128xf32> to vector<1x128xf32>
    %c0_83 = arith.constant 0 : index
    %c0_84 = arith.constant 0 : index
    %78 = vector.load %arg9[%c0_83, %c0_84] : memref<128x8xf32, #tpu.memory_space<vmem>>, vector<128x8xf32>
    %cst_85 = arith.constant dense<0.000000e+00> : vector<1x8xf32>
    %79 = tpu.matmul %77, %78, %cst_85 {dimension_numbers = #tpu.dot_dimension_numbers<[1], [0], [0], [1], [0, 0, 1, 1], [], []>} : vector<1x128xf32>, vector<128x8xf32>, vector<1x8xf32> -> vector<1x8xf32>
    %cst_86 = arith.constant 0.001953125 : f32
    %80 = vector.broadcast %cst_86 : f32 to vector<1x8xf32>
    %81 = arith.mulf %79, %80 : vector<1x8xf32>
    %c0_87 = arith.constant 0 : index
    %c0_88 = arith.constant 0 : index
    %82 = vector.load %arg10[%c0_87, %c0_88] : memref<8x128xf32, #tpu.memory_space<vmem>>, vector<8x128xf32>
    %cst_89 = arith.constant dense<0.000000e+00> : vector<1x128xf32>
    %83 = tpu.matmul %81, %82, %cst_89 {dimension_numbers = #tpu.dot_dimension_numbers<[1], [0], [0], [1], [0, 0, 1, 1], [], []>} : vector<1x8xf32>, vector<8x128xf32>, vector<1x128xf32> -> vector<1x128xf32>
    %84 = vector.broadcast %83 : vector<1x128xf32> to vector<32x128xf32>
    %85 = arith.subf %75, %84 : vector<32x128xf32>
    %86 = arith.mulf %85, %85 : vector<32x128xf32>
    %cst_90 = arith.constant dense<0.000000e+00> : vector<128xf32>
    %87 = vector.multi_reduction <add>, %86, %cst_90 [0] : vector<32x128xf32> to vector<128xf32>
    %88 = vector.shape_cast %87 : vector<128xf32> to vector<1x128xf32>
    %c0_91 = arith.constant 0 : index
    %c0_92 = arith.constant 0 : index
    %89 = vector.load %arg9[%c0_91, %c0_92] : memref<128x8xf32, #tpu.memory_space<vmem>>, vector<128x8xf32>
    %cst_93 = arith.constant dense<0.000000e+00> : vector<1x8xf32>
    %90 = tpu.matmul %88, %89, %cst_93 {dimension_numbers = #tpu.dot_dimension_numbers<[1], [0], [0], [1], [0, 0, 1, 1], [], []>} : vector<1x128xf32>, vector<128x8xf32>, vector<1x8xf32> -> vector<1x8xf32>
    %cst_94 = arith.constant 0.001953125 : f32
    %91 = vector.broadcast %cst_94 : f32 to vector<1x8xf32>
    %92 = arith.mulf %90, %91 : vector<1x8xf32>
    %c0_95 = arith.constant 0 : index
    %c0_96 = arith.constant 0 : index
    %93 = vector.load %arg10[%c0_95, %c0_96] : memref<8x128xf32, #tpu.memory_space<vmem>>, vector<8x128xf32>
    %cst_97 = arith.constant dense<0.000000e+00> : vector<1x128xf32>
    %94 = tpu.matmul %92, %93, %cst_97 {dimension_numbers = #tpu.dot_dimension_numbers<[1], [0], [0], [1], [0, 0, 1, 1], [], []>} : vector<1x8xf32>, vector<8x128xf32>, vector<1x128xf32> -> vector<1x128xf32>
    %c0_98 = arith.constant 0 : index
    %c0_99 = arith.constant 0 : index
    %95 = vector.load %arg7[%c0_98, %c0_99] : memref<1x128xf32, #tpu.memory_space<vmem>>, vector<1x128xf32>
    %cst_100 = arith.constant 9.99999974E-6 : f32
    %96 = vector.broadcast %cst_100 : f32 to vector<1x128xf32>
    %97 = arith.addf %94, %96 : vector<1x128xf32>
    %98 = math.rsqrt %97 : vector<1x128xf32>
    %99 = arith.mulf %95, %98 : vector<1x128xf32>
    %100 = vector.broadcast %99 : vector<1x128xf32> to vector<32x128xf32>
    %101 = arith.mulf %85, %100 : vector<32x128xf32>
    %c0_101 = arith.constant 0 : index
    %c0_102 = arith.constant 0 : index
    %102 = vector.load %arg8[%c0_101, %c0_102] : memref<1x128xf32, #tpu.memory_space<vmem>>, vector<1x128xf32>
    %103 = vector.broadcast %102 : vector<1x128xf32> to vector<32x128xf32>
    %104 = arith.addf %101, %103 : vector<32x128xf32>
    %cst_103 = arith.constant 0.000000e+00 : f32
    %105 = vector.broadcast %cst_103 : f32 to vector<32x128xf32>
    %106 = arith.maximumf %104, %105 : vector<32x128xf32>
    %c0_104 = arith.constant 0 : index
    %c0_105 = arith.constant 0 : index
    %107 = vector.load %arg11[%c0_104, %c0_105] : memref<32x128xf32, #tpu.memory_space<vmem>>, vector<32x128xf32>
    tpu.vector_store %arg11[%c0_104, %c0_105], %106 {strides = array<i32>} : memref<32x128xf32, #tpu.memory_space<vmem>>, vector<32x128xf32>,
    return
  }
}

</mosaic_0001>

<bundles_post_ra>
// kernel: tile.61
= control target key start
LH: loop header
LB: loop body
LE: loop exit
PB: predicated region body
PF: predicated region fallthrough
CT: control target
= control target key end

     0   :  { %vm6_vm0 = vcmask 1043458   ;;  %vm10_vm1 = vcmask 1045508   ;;  %vm14_vm2 = vcmask 1047558   ;;  %s19_s6 = smov 3  ;;  %s22_s7 = smov 12  ;;  %vm16_vm3 = vcmask 64512   ;;  %s736_s0 = inlined_call_operand.vmem [shape: f32[8,16,8], index: 0, kind: input, shape index: {}]   ;;  %s737_s1 = inlined_call_operand.vmem [shape: f32[8,128], index: 1, kind: output, shape index: {}]  }
   0x1   :  { %v348_v0 = vld [vmem:[%s736_s0 + $0xf] ss:$16 sm:%s19_s6]   ;;  %s27_s12 = smov 48  ;;  %s32_s13 = smov 192  ;;  %vm38_vm4 = vcmask 1048512   ;;  %vm60_vm5 = vcmask 982912  }
   0x2   :  { %v349_v1 = vld [vmem:[%s736_s0 + $0xf] ss:$16 sm:%s22_s7]   ;;  %s63_s18 = smov 3  ;;  %s66_s21 = smov 12  ;;  %vm82_vm6 = vcmask 917312   ;;  %vm104_vm7 = vcmask 851712  }
   0x3   :  { %v25_v2 = vsel %vm6_vm0, %v349_v1, %v348_v0  ;;  %v350_v3 = vld [vmem:[%s736_s0 + $0xf] ss:$16 sm:%s27_s12]   ;;  %v356_v6 = vld [vmem:[%s736_s0 + $0xd] ss:$16 sm:%s63_s18]   ;;  %s71_s22 = smov 48  ;;  %s76_s27 = smov 192 }
   0x4   :  { %v351_v4 = vld [vmem:[%s736_s0 + $0xf] ss:$16 sm:%s32_s13]   ;;  %v30_v5 = vsel %vm10_vm1, %v350_v3, %v25_v2  ;;  %v357_v8 = vld [vmem:[%s736_s0 + $0xd] ss:$16 sm:%s66_s21]   ;;  %s423_s28 = smov 120   ;;  %s41_s2 = smov 3 }
   0x5   :  { %v35_v7 = vsel %vm14_vm2, %v351_v4, %v30_v5  ;;  %v358_v9 = vld [vmem:[%s736_s0 + $0xd] ss:$16 sm:%s71_s22]   ;;  %v69_v10 = vsel %vm6_vm0, %v357_v8, %v356_v6  ;;  %s44_s3 = smov 12  ;;  %v352_v13 = vld [vmem:[%s736_s0 + $0xe] ss:$16 sm:%s41_s2]   ;;  %s49_s8 = smov 48 }
   0x6   :  { %36 = vrot.lane.b32.xlu0 %v35_v7, %s423_s28  ;;  %v359_v11 = vld [vmem:[%s736_s0 + $0xd] ss:$16 sm:%s76_s27]   ;;  %v74_v12 = vsel %vm10_vm1, %v358_v9, %v69_v10  ;;  %s54_s9 = smov 192  ;;  %s85_s14 = smov 3  ;;  %vm126_vm8 = vcmask 786112   ;;  %vm148_vm9 = vcmask 720512  }
   0x7   :  { %v353_v14 = vld [vmem:[%s736_s0 + $0xe] ss:$16 sm:%s44_s3]   ;;  %v79_v15 = vsel %vm14_vm2, %v359_v11, %v74_v12  ;;  %s424_s15 = smov 104   ;;  %v360_v20 = vld [vmem:[%s736_s0 + $0xc] ss:$16 sm:%s85_s14]   ;;  %s88_s18 = smov 12 }
   0x8   :  { %v47_v16 = vsel %vm6_vm0, %v353_v14, %v352_v13  ;;  %v354_v17 = vld [vmem:[%s736_s0 + $0xe] ss:$16 sm:%s49_s8]   ;;  %80 = vrot.lane.b32.xlu1 %v79_v15, %s424_s15  ;;  %s93_s19 = smov 48  ;;  %s98_s24 = smov 192  ;;  %vm170_vm10 = vcmask 654912   ;;  %vm192_vm11 = vcmask 589312  }
   0x9   :  { %v355_v18 = vld [vmem:[%s736_s0 + $0xe] ss:$16 sm:%s54_s9]   ;;  %v52_v19 = vsel %vm10_vm1, %v354_v17, %v47_v16  ;;  %v361_v22 = vld [vmem:[%s736_s0 + $0xc] ss:$16 sm:%s88_s18]   ;;  %s425_s25 = smov 112   ;;  %s107_s28 = smov 3 }
   0xa   :  { %v57_v21 = vsel %vm14_vm2, %v355_v18, %v52_v19  ;;  %v362_v23 = vld [vmem:[%s736_s0 + $0xc] ss:$16 sm:%s93_s19]   ;;  %v91_v24 = vsel %vm6_vm0, %v361_v22, %v360_v20  ;;  %s110_s29 = smov 12  ;;  %v364_v27 = vld [vmem:[%s736_s0 + $0xb] ss:$16 sm:%s107_s28]   ;;  %s115_s5 = smov 48 }
   0xb   :  { %58 = vrot.lane.b32.xlu0 %v57_v21, %s425_s25  ;;  %v363_v25 = vld [vmem:[%s736_s0 + $0xc] ss:$16 sm:%s98_s24]   ;;  %v96_v26 = vsel %vm10_vm1, %v362_v23, %v91_v24  ;;  %s120_s6 = smov 192  ;;  %s129_s11 = smov 3  ;;  %vm214_vm12 = vcmask 523712   ;;  %vm236_vm13 = vcmask 458112  }
   0xc   :  { %v365_v28 = vld [vmem:[%s736_s0 + $0xb] ss:$16 sm:%s110_s29]   ;;  %v101_v29 = vsel %vm14_vm2, %v363_v25, %v96_v26  ;;  %s426_s12 = smov 96   ;;  %v368_v34 = vld [vmem:[%s736_s0 + $0xa] ss:$16 sm:%s129_s11]   ;;  %s132_s15 = smov 12 }
   0xd   :  { %v113_v30 = vsel %vm6_vm0, %v365_v28, %v364_v27  ;;  %v366_v31 = vld [vmem:[%s736_s0 + $0xb] ss:$16 sm:%s115_s5]   ;;  %102 = vrot.lane.b32.xlu1 %v101_v29, %s426_s12  ;;  %s137_s16 = smov 48  ;;  %s142_s21 = smov 192  ;;  %vm258_vm14 = vcmask 392512   ;;  %vm280_vm15 = vcmask 326912  }
   0xe   :  { %v367_v32 = vld [vmem:[%s736_s0 + $0xb] ss:$16 sm:%s120_s6]   ;;  %v118_v33 = vsel %vm10_vm1, %v366_v31, %v113_v30  ;;  %v369_v36 = vld [vmem:[%s736_s0 + $0xa] ss:$16 sm:%s132_s15]   ;;  %s427_s22 = smov 88   ;;  %s151_s25 = smov 3 }
   0xf   :  { %v123_v35 = vsel %vm14_vm2, %v367_v32, %v118_v33  ;;  %v370_v37 = vld [vmem:[%s736_s0 + $0xa] ss:$16 sm:%s137_s16]   ;;  %v135_v38 = vsel %vm6_vm0, %v369_v36, %v368_v34  ;;  %s154_s26 = smov 12  ;;  %v372_v41 = vld [vmem:[%s736_s0 + $0x9] ss:$16 sm:%s151_s25]   ;;  %s159_s2 = smov 48 }
  0x10   :  { %124 = vrot.lane.b32.xlu0 %v123_v35, %s427_s22  ;;  %v371_v39 = vld [vmem:[%s736_s0 + $0xa] ss:$16 sm:%s142_s21]   ;;  %v140_v40 = vsel %vm10_vm1, %v370_v37, %v135_v38  ;;  %s164_s3 = smov 192  ;;  %s173_s8 = smov 3 }
  0x11   :  { %v373_v42 = vld [vmem:[%s736_s0 + $0x9] ss:$16 sm:%s154_s26]   ;;  %v145_v43 = vsel %vm14_vm2, %v371_v39, %v140_v40  ;;  %s428_s9 = smov 80   ;;  %v376_v48 = vld [vmem:[%s736_s0 + $0x8] ss:$16 sm:%s173_s8]   ;;  %s176_s12 = smov 12 }
  0x12   :  { %v157_v44 = vsel %vm6_vm0, %v373_v42, %v372_v41  ;;  %v374_v45 = vld [vmem:[%s736_s0 + $0x9] ss:$16 sm:%s159_s2]   ;;  %146 = vrot.lane.b32.xlu1 %v145_v43, %s428_s9  ;;  %s181_s13 = smov 48  ;;  %s186_s18 = smov 192 }
  0x13   :  { %v375_v46 = vld [vmem:[%s736_s0 + $0x9] ss:$16 sm:%s164_s3]   ;;  %v162_v47 = vsel %vm10_vm1, %v374_v45, %v157_v44  ;;  %v377_v50 = vld [vmem:[%s736_s0 + $0x8] ss:$16 sm:%s176_s12]   ;;  %s429_s19 = smov 72   ;;  %s195_s22 = smov 3 }
  0x14   :  { %v167_v49 = vsel %vm14_vm2, %v375_v46, %v162_v47  ;;  %v378_v51 = vld [vmem:[%s736_s0 + $0x8] ss:$16 sm:%s181_s13]   ;;  %v179_v52 = vsel %vm6_vm0, %v377_v50, %v376_v48  ;;  %s198_s23 = smov 12  ;;  %v380_v55 = vld [vmem:[%s736_s0 + $0x7] ss:$16 sm:%s195_s22]   ;;  %s203_s28 = smov 48 }
  0x15   :  { %168 = vrot.lane.b32.xlu0 %v167_v49, %s429_s19  ;;  %v379_v53 = vld [vmem:[%s736_s0 + $0x8] ss:$16 sm:%s186_s18]   ;;  %v184_v54 = vsel %vm10_vm1, %v378_v51, %v179_v52  ;;  %s208_s29 = smov 192  ;;  %s217_s5 = smov 3 }
  0x16   :  { %v381_v56 = vld [vmem:[%s736_s0 + $0x7] ss:$16 sm:%s198_s23]   ;;  %v189_v57 = vsel %vm14_vm2, %v379_v53, %v184_v54  ;;  %s430_s6 = smov 64   ;;  %v384_v62 = vld [vmem:[%s736_s0 + $0x6] ss:$16 sm:%s217_s5]   ;;  %s220_s9 = smov 12 }
  0x17   :  { %v201_v58 = vsel %vm6_vm0, %v381_v56, %v380_v55  ;;  %v382_v59 = vld [vmem:[%s736_s0 + $0x7] ss:$16 sm:%s203_s28]   ;;  %190 = vrot.lane.b32.xlu1 %v189_v57, %s430_s6  ;;  %s225_s10 = smov 48  ;;  %s230_s15 = smov 192 }
  0x18   :  { %v383_v60 = vld [vmem:[%s736_s0 + $0x7] ss:$16 sm:%s208_s29]   ;;  %v206_v61 = vsel %vm10_vm1, %v382_v59, %v201_v58  ;;  %v385_v0 = vld [vmem:[%s736_s0 + $0x6] ss:$16 sm:%s220_s9]   ;;  %s431_s16 = smov 56   ;;  %s239_s19 = smov 3 }
  0x19   :  { %v211_v63 = vsel %vm14_vm2, %v383_v60, %v206_v61  ;;  %v386_v1 = vld [vmem:[%s736_s0 + $0x6] ss:$16 sm:%s225_s10]   ;;  %v223_v2 = vsel %vm6_vm0, %v385_v0, %v384_v62  ;;  %s242_s20 = smov 12  ;;  %v388_v5 = vld [vmem:[%s736_s0 + $0x5] ss:$16 sm:%s239_s19]   ;;  %s247_s25 = smov 48 }
  0x1a   :  { %212 = vrot.lane.b32.xlu0 %v211_v63, %s431_s16  ;;  %v387_v3 = vld [vmem:[%s736_s0 + $0x6] ss:$16 sm:%s230_s15]   ;;  %v228_v4 = vsel %vm10_vm1, %v386_v1, %v223_v2  ;;  %s252_s26 = smov 192  ;;  %s261_s2 = smov 3 }
  0x1b   :  { %v389_v6 = vld [vmem:[%s736_s0 + $0x5] ss:$16 sm:%s242_s20]   ;;  %v233_v7 = vsel %vm14_vm2, %v387_v3, %v228_v4  ;;  %s432_s3 = smov 48   ;;  %v392_v12 = vld [vmem:[%s736_s0 + $0x4] ss:$16 sm:%s261_s2]   ;;  %s264_s6 = smov 12 }
  0x1c   :  { %v245_v8 = vsel %vm6_vm0, %v389_v6, %v388_v5  ;;  %v390_v9 = vld [vmem:[%s736_s0 + $0x5] ss:$16 sm:%s247_s25]   ;;  %234 = vrot.lane.b32.xlu1 %v233_v7, %s432_s3  ;;  %s269_s7 = smov 48  ;;  %s274_s12 = smov 192 }
  0x1d   :  { %v391_v10 = vld [vmem:[%s736_s0 + $0x5] ss:$16 sm:%s252_s26]   ;;  %v250_v11 = vsel %vm10_vm1, %v390_v9, %v245_v8  ;;  %v393_v14 = vld [vmem:[%s736_s0 + $0x4] ss:$16 sm:%s264_s6]   ;;  %s433_s13 = smov 40   ;;  %s283_s16 = smov 3 }
  0x1e   :  { %v255_v13 = vsel %vm14_vm2, %v391_v10, %v250_v11  ;;  %v394_v15 = vld [vmem:[%s736_s0 + $0x4] ss:$16 sm:%s269_s7]   ;;  %v267_v16 = vsel %vm6_vm0, %v393_v14, %v392_v12  ;;  %s286_s17 = smov 12  ;;  %v396_v19 = vld [vmem:[%s736_s0 + $0x3] ss:$16 sm:%s283_s16]   ;;  %s291_s22 = smov 48 }
  0x1f   :  { %256 = vrot.lane.b32.xlu0 %v255_v13, %s433_s13  ;;  %v395_v17 = vld [vmem:[%s736_s0 + $0x4] ss:$16 sm:%s274_s12]   ;;  %v272_v18 = vsel %vm10_vm1, %v394_v15, %v267_v16  ;;  %s296_s23 = smov 192  ;;  %s305_s28 = smov 3 }
  0x20   :  { %v397_v20 = vld [vmem:[%s736_s0 + $0x3] ss:$16 sm:%s286_s17]   ;;  %v277_v21 = vsel %vm14_vm2, %v395_v17, %v272_v18  ;;  %s434_s29 = smov 32   ;;  %v400_v26 = vld [vmem:[%s736_s0 + $0x2] ss:$16 sm:%s305_s28]   ;;  %s308_s3 = smov 12 }
  0x21   :  { %v289_v22 = vsel %vm6_vm0, %v397_v20, %v396_v19  ;;  %v398_v23 = vld [vmem:[%s736_s0 + $0x3] ss:$16 sm:%s291_s22]   ;;  %278 = vrot.lane.b32.xlu1 %v277_v21, %s434_s29  ;;  %s313_s4 = smov 48  ;;  %s318_s9 = smov 192 }
  0x22   :  { %v399_v24 = vld [vmem:[%s736_s0 + $0x3] ss:$16 sm:%s296_s23]   ;;  %v294_v25 = vsel %vm10_vm1, %v398_v23, %v289_v22  ;;  %v401_v28 = vld [vmem:[%s736_s0 + $0x2] ss:$16 sm:%s308_s3]   ;;  %s435_s10 = smov 24   ;;  %s327_s13 = smov 3 }
  0x23   :  { %v299_v27 = vsel %vm14_vm2, %v399_v24, %v294_v25  ;;  %v402_v29 = vld [vmem:[%s736_s0 + $0x2] ss:$16 sm:%s313_s4]   ;;  %v311_v30 = vsel %vm6_vm0, %v401_v28, %v400_v26  ;;  %s330_s14 = smov 12  ;;  %v404_v33 = vld [vmem:[%s736_s0 + $0x1] ss:$16 sm:%s327_s13]   ;;  %s335_s19 = smov 48 }
  0x24   :  { %300 = vrot.lane.b32.xlu0 %v299_v27, %s435_s10  ;;  %v403_v31 = vld [vmem:[%s736_s0 + $0x2] ss:$16 sm:%s318_s9]   ;;  %v316_v32 = vsel %vm10_vm1, %v402_v29, %v311_v30  ;;  %s340_s20 = smov 192  ;;  %s2_s25 = smov 3 }
  0x25   :  { %v405_v34 = vld [vmem:[%s736_s0 + $0x1] ss:$16 sm:%s330_s14]   ;;  %v321_v35 = vsel %vm14_vm2, %v403_v31, %v316_v32  ;;  %s436_s26 = smov 16   ;;  %s4_s27 = smov 12  ;;  %v3_v40 = vld [vmem:[%s736_s0] ss:$16 sm:%s2_s25]  }
  0x26   :  { %v333_v36 = vsel %vm6_vm0, %v405_v34, %v404_v33  ;;  %v406_v37 = vld [vmem:[%s736_s0 + $0x1] ss:$16 sm:%s335_s19]   ;;  %322 = vrot.lane.b32.xlu1 %v321_v35, %s436_s26  ;;  %s8_s28 = smov 48  ;;  %s12_s2 = smov 192 }
  0x27   :  { %v407_v38 = vld [vmem:[%s736_s0 + $0x1] ss:$16 sm:%s340_s20]   ;;  %v338_v39 = vsel %vm10_vm1, %v406_v37, %v333_v36  ;;  %v5_v42 = vld [vmem:[%s736_s0] ss:$16 sm:%s4_s27]   ;;  %s437_s7 = smov 8  }
  0x28   :  { %v343_v41 = vsel %vm14_vm2, %v407_v38, %v338_v39  ;;  %v9_v43 = vld [vmem:[%s736_s0] ss:$16 sm:%s8_s28]   ;;  %v7_v44 = vsel %vm6_vm0, %v5_v42, %v3_v40  ;;  %vm302_vm0 = vcmask 261312  }
  0x29   :  { %344 = vrot.lane.b32.xlu0 %v343_v41, %s437_s7  ;;  %v13_v45 = vld [vmem:[%s736_s0] ss:$16 sm:%s12_s2]   ;;  %v11_v46 = vsel %vm10_vm1, %v9_v43, %v7_v44  ;;  %vm324_vm1 = vcmask 195712  }
  0x2a   :  { %v15_v47 = vsel %vm14_vm2, %v13_v45, %v11_v46  ;;  %vm346_vm2 = vcmask 130112  }
  0x2b   :  { %17 = vst.msk [vmem:[%s737_s1] sm:$0xff] %vm16_vm3, %v15_v47  }
  0x78   :  { %v37_v48 = vpop.permute.xlu0 %36  }
  0x79   :  { %39 = vst.msk [vmem:[%s737_s1] sm:$0xff] %vm38_vm4, %v37_v48  }
  0x7a   :  { %v81_v49 = vpop.permute.xlu1 %80  }
  0x7d   :  { %v59_v50 = vpop.permute.xlu0 %58  }
  0x7e   :  { %61 = vst.msk [vmem:[%s737_s1] sm:$0xff] %vm60_vm5, %v59_v50  }
  0x7f   :  { %83 = vst.msk [vmem:[%s737_s1] sm:$0xff] %vm82_vm6, %v81_v49   ;;  %v103_v51 = vpop.permute.xlu1 %102  }
  0x80   :  { %105 = vst.msk [vmem:[%s737_s1] sm:$0xff] %vm104_vm7, %v103_v51  }
  0x82   :  { %v125_v52 = vpop.permute.xlu0 %124  }
  0x83   :  { %127 = vst.msk [vmem:[%s737_s1] sm:$0xff] %vm126_vm8, %v125_v52  }
  0x84   :  { %v147_v53 = vpop.permute.xlu1 %146  }
  0x85   :  { %149 = vst.msk [vmem:[%s737_s1] sm:$0xff] %vm148_vm9, %v147_v53  }
  0x87   :  { %v169_v54 = vpop.permute.xlu0 %168  }
  0x88   :  { %171 = vst.msk [vmem:[%s737_s1] sm:$0xff] %vm170_vm10, %v169_v54  }
  0x89   :  { %v191_v55 = vpop.permute.xlu1 %190  }
  0x8a   :  { %193 = vst.msk [vmem:[%s737_s1] sm:$0xff] %vm192_vm11, %v191_v55  }
  0x8c   :  { %v213_v56 = vpop.permute.xlu0 %212  }
  0x8d   :  { %215 = vst.msk [vmem:[%s737_s1] sm:$0xff] %vm214_vm12, %v213_v56  }
  0x8e   :  { %v235_v57 = vpop.permute.xlu1 %234  }
  0x8f   :  { %237 = vst.msk [vmem:[%s737_s1] sm:$0xff] %vm236_vm13, %v235_v57  }
  0x91   :  { %v257_v58 = vpop.permute.xlu0 %256  }
  0x92   :  { %259 = vst.msk [vmem:[%s737_s1] sm:$0xff] %vm258_vm14, %v257_v58  }
  0x93   :  { %v279_v59 = vpop.permute.xlu1 %278  }
  0x94   :  { %281 = vst.msk [vmem:[%s737_s1] sm:$0xff] %vm280_vm15, %v279_v59  }
  0x96   :  { %v301_v60 = vpop.permute.xlu0 %300  }
  0x97   :  { %303 = vst.msk [vmem:[%s737_s1] sm:$0xff] %vm302_vm0, %v301_v60  }
  0x98   :  { %v323_v61 = vpop.permute.xlu1 %322  }
  0x99   :  { %325 = vst.msk [vmem:[%s737_s1] sm:$0xff] %vm324_vm1, %v323_v61  }
  0x9b   :  { %v345_v62 = vpop.permute.xlu0 %344  }
  0x9c   :  { %347 = vst.msk [vmem:[%s737_s1] sm:$0xff] %vm346_vm2, %v345_v62  }

// kernel: double_conv_forward.1
= control target key start
LH: loop header
LB: loop body
LE: loop exit
PB: predicated region body
PF: predicated region fallthrough
CT: control target
= control target key end

     0   :  { %vm40_vm0 = vsmask.f32 256  ;;  %v42_v1 = vld [vmem:[#allocation2] sm:$0x1]  ;;  %vm39_vm1 = vcmask 516096   ;;  %vm102_vm2 = vcmask 519168   ;;  %s3001_s1 = inlined_call_operand.vmem [shape: bf16[3,64,128], index: 1, kind: input, shape index: {}]   ;;  %s3002_s0 = inlined_call_operand.vmem [shape: bf16[2,16,64], index: 0, kind: input, shape index: {}]   ;;  %s3003_s4 = inlined_call_operand.vmem [shape: f32[128,8], index: 4, kind: input, shape index: {}, may-alias: {4,9}]   ;;  %s3004_s5 = inlined_call_operand.vmem [shape: f32[8,128], index: 5, kind: input, shape index: {}, may-alias: {5,10}]   ;;  %s3005_s6 = inlined_call_operand.vmem [shape: bf16[3,128,128], index: 6, kind: input, shape index: {}]   ;;  %s3006_s9 = inlined_call_operand.vmem [shape: f32[128,8], index: 9, kind: input, shape index: {}, may-alias: {4,9}]   ;;  %s3007_s2 = inlined_call_operand.vmem [shape: f32[1,128], index: 2, kind: input, shape index: {}]   ;;  %s3008_s3 = inlined_call_operand.vmem [shape: f32[1,128], index: 3, kind: input, shape index: {}]   ;;  %s3009_s10 = inlined_call_operand.vmem [shape: f32[8,128], index: 10, kind: input, shape index: {}, may-alias: {5,10}]   ;;  %s3010_s7 = inlined_call_operand.vmem [shape: f32[1,128], index: 7, kind: input, shape index: {}]   ;;  %s3011_s8 = inlined_call_operand.vmem [shape: f32[1,128], index: 8, kind: input, shape index: {}]   ;;  %s3012_s11 = inlined_call_operand.vmem [shape: f32[32,128], index: 11, kind: output, shape index: {}]  }
   0x1   :  { %v2369_v0 = vld [vmem:[%s3001_s1 + $0x20] sm:$0xff]   ;;  %v2370_v2 = vld [vmem:[%s3001_s1 + $0x28] sm:$0xff]   ;;  %v2371_v3 = vld [vmem:[%s3001_s1 + $0x30] sm:$0xff]   ;;  %vm48_vm4 = vsmask.f32 7938  ;;  %v2413_v7 = vmov 0.0|0.0  }
   0x2   :  { %1998 = vmatprep.subr.bf16.mxu0 %v2369_v0  ;;  %vm2487_vm3 = vmand %vm39_vm1, %vm40_vm0  ;;  %v45_v5 = vld [vmem:[#allocation2 + $0xc] sm:$0x1]  ;;  %v50_v6 = vld [vmem:[#allocation2 + $0x8] sm:$0x1]  ;;  %2254 = vmatprep.subr.bf16.mxu1 %v2413_v7  ;;  %vm60_vm6 = vsmask.f32 4368 }
   0x3   :  { %1999 = vmatpush3.bf16.msra.mxu0 %v2369_v0  ;;  %v43_v8 = vsel %vm2487_vm3, 0, %v42_v1  ;;  %v46_v9 = vsel %vm2487_vm3, 0, %v45_v5  ;;  %vm49_vm5 = vmand %vm39_vm1, %vm48_vm4  ;;  %v53_v10 = vld [vmem:[#allocation2 + $0x14] sm:$0x1]  ;;  %v56_v11 = vld [vmem:[%s3002_s0] sm:$0xf] }
   0x4   :  { %2000 = vmatprep.subr.bf16.mxu0 %v2370_v2  ;;  %v2372_v12 = vld [vmem:[%s3001_s1 + $0x38] sm:$0xff]   ;;  %44 = vst [vmem:[#allocation2] sm:$0x1] %v43_v8  ;;  %47 = vst [vmem:[#allocation2 + $0xc] sm:$0x1] %v46_v9  ;;  %v51_v13 = vsel %vm49_vm5, 0, %v50_v6 }
   0x5   :  { %v54_v14 = vsel %vm49_vm5, 0, %v53_v10  ;;  %v57_v15 = vld [vmem:[%s3002_s0 + $0x4] sm:$0xf]  ;;  %v58_v16 = vld [vmem:[%s3002_s0 + $0x8] sm:$0xf]  ;;  %v63_v18 = vshrl.u32 %v56_v11, 16  ;;  %vm2515_vm7 = vmand %vm102_vm2, %vm48_vm4 }
   0x6   :  { %52 = vst [vmem:[#allocation2 + $0x8] sm:$0x1] %v51_v13  ;;  %55 = vst [vmem:[#allocation2 + $0x14] sm:$0x1] %v54_v14  ;;  %v59_v17 = vld [vmem:[%s3002_s0 + $0xc] sm:$0xf] }
   0x7   :  { %2001 = vmatpush3.bf16.msra.mxu0 %v2370_v2  ;;  %v66_v19 = vshll.u32 %v56_v11, 16  ;;  %v71_v20 = vshrl.u32 %v57_v15, 16  ;;  %v74_v21 = vshll.u32 %v57_v15, 16  ;;  %v80_v22 = vshrl.u32 %v58_v16, 16  ;;  %vm2521_vm8 = vmor %vm40_vm0, %vm60_vm6  ;;  %v2528_v38 = vld [vmem:[%s3001_s1] sm:$0xff]   ;;  %v499_v52 = vld [vmem:[%s3003_s4 + $0x8] sm:$0xff] }
   0x8   :  { %2002 = vmatprep.subr.bf16.mxu0 %v2371_v3  ;;  %v83_v23 = vshll.u32 %v58_v16, 16  ;;  %v65_v24 = vrot.slane %v63_v18, 7  ;;  %v88_v25 = vshrl.u32 %v59_v17, 16  ;;  %v91_v26 = vshll.u32 %v59_v17, 16  ;;  %v498_v51 = vld [vmem:[%s3003_s4] sm:$0xff]  ;;  %v500_v53 = vld [vmem:[%s3003_s4 + $0x10] sm:$0xff] }
   0x9   :  { %v73_v27 = vrot.slane %v71_v20, 7  ;;  %v82_v28 = vrot.slane %v80_v22, 7  ;;  %v501_v54 = vld [vmem:[%s3003_s4 + $0x18] sm:$0xff]  ;;  %vm133_vm9 = vsmask.f32 3328  ;;  %v2557_v55 = vpack.c.bf16 %v499_v52, %v498_v51  ;;  %v502_v56 = vld [vmem:[%s3003_s4 + $0x20] sm:$0xff] }
   0xa   :  { %v68_v31 = vor.u32 %v66_v19, %v65_v24  ;;  %v69_v32 = vrot.slane %v65_v24, 4  ;;  %v90_v33 = vrot.slane %v88_v25, 7  ;;  %vm134_vm10 = vsmask.f32 7440  ;;  %v503_v57 = vld [vmem:[%s3003_s4 + $0x28] sm:$0xff]  ;;  %v2394_v20 = vld [vmem:[%s3005_s6 + $0x10] sm:$0xff]  }
   0xb   :  { %2003 = vmatpush3.bf16.msra.mxu0 %v2371_v3  ;;  %v76_v34 = vor.u32 %v74_v21, %v73_v27  ;;  %v78_v35 = vrot.slane %v73_v27, 4  ;;  %v85_v36 = vor.u32 %v83_v23, %v82_v28  ;;  %v86_v37 = vrot.slane %v82_v28, 4  ;;  %v104_v40 = vld [vmem:[#allocation2] sm:$0xf]  ;;  %v112_v41 = vld [vmem:[#allocation2 + $0xc] sm:$0xf]  ;;  %2256 = vmatpush3.bf16.msra.mxu1 %v2557_v55  ;;  %vm2592_vm11 = vmor %vm133_vm9, %vm134_vm10 }
   0xc   :  { %2004 = vmatprep.subr.bf16.mxu0 %v2372_v12  ;;  %v93_v39 = vor.u32 %v91_v26, %v90_v33  ;;  %v95_v42 = vrot.slane %v90_v33, 4  ;;  %v105_v44 = vsel %vm2515_vm7, %v68_v31, %v104_v40  ;;  %v2569_v61 = vpack.c.bf16 %v501_v54, %v500_v53  ;;  %2257 = vmatprep.subr.bf16.mxu1 %v2413_v7  ;;  %v2380_v54 = vld [vmem:[%s3001_s1 + $0x48] sm:$0xff]  }
   0xd   :  { %v77_v43 = vsel %vm2521_vm8, %v69_v32, %v76_v34  ;;  %v109_v45 = vld [vmem:[#allocation2 + $0x8] sm:$0x1]  ;;  %v113_v46 = vsel %vm2515_vm7, %v85_v36, %v112_v41  ;;  %v116_v47 = vld [vmem:[#allocation2 + $0x14] sm:$0x1]  ;;  %106 = vst [vmem:[#allocation2] sm:$0xf] %v105_v44  ;;  %v2582_v6 = vpack.c.bf16 %v503_v57, %v502_v56 }
   0xe   :  { %v94_v48 = vsel %vm2521_vm8, %v86_v37, %v93_v39  ;;  %108 = vst.msk [vmem:[#allocation2 + $0x4] sm:$0xf] %vm102_vm2, %v77_v43  ;;  %v110_v49 = vsel %vm2487_vm3, %v78_v35, %v109_v45  ;;  %114 = vst [vmem:[#allocation2 + $0xc] sm:$0xf] %v113_v46  ;;  %v117_v50 = vsel %vm2487_vm3, %v95_v42, %v116_v47  ;;  %vm223_vm12 = vcmask 523264   ;;  %v2374_v41 = vld [vmem:[%s3001_s1 + $0x8] sm:$0xff]  }
   0xf   :  { %2005 = vmatpush3.bf16.msra.mxu0 %v2372_v12  ;;  %111 = vst [vmem:[#allocation2 + $0x8] sm:$0x1] %v110_v49  ;;  %115 = vst.msk [vmem:[#allocation2 + $0x10] sm:$0xf] %vm102_vm2, %v94_v48  ;;  %2259 = vmatpush3.bf16.msra.mxu1 %v2569_v61  ;;  %v2375_v42 = vld [vmem:[%s3001_s1 + $0x10] sm:$0xff]   ;;  %vm374_vm13 = vcmask 1042432  }
  0x10   :  { %2010 = vmatprep.subr.bf16.mxu0 %v2528_v38  ;;  %118 = vst [vmem:[#allocation2 + $0x14] sm:$0x1] %v117_v50  ;;  %2260 = vmatprep.subr.bf16.mxu1 %v2413_v7  ;;  %vm375_vm14 = vcmask 1046532   ;;  %v2378_v49 = vld [vmem:[%s3001_s1 + $0x40] sm:$0xff]   ;;  %v2381_v57 = vld [vmem:[%s3001_s1 + $0x50] sm:$0xff]   ;;  %vm2414_vm1 = vmmov 0  }
  0x11   :  { %vm2623_vm15 = vmor %vm374_vm13, %vm375_vm14  ;;  %vm586_vm2 = vcmask 64512   ;;  %vm853_vm3 = vcmask 1040384   ;;  %v2404_v48 = vld [vmem:[%s3005_s6 + $0x98] sm:$0xff]  }
  0x12   :  { %vm2740_vm5 = vmand %vm853_vm3, %vm40_vm0  ;;  %vm920_vm0 = vcmask 1043456  }
  0x13   :  { %2262 = vmatpush3.bf16.msra.mxu1 %v2582_v6  ;;  %vm861_vm6 = vmand %vm853_vm3, %vm48_vm4 }
  0x14   :  { %v119_v58 = vld [vmem:[#allocation2] sm:$0xf]  ;;  %2263 = vmatprep.subr.bf16.mxu1 %v2413_v7  ;;  %vm2818_vm7 = vmand %vm920_vm0, %vm48_vm4 }
  0x15   :  { %v2565_v59 = vld [vmem:[#allocation2 + $0x4] sm:$0xf]  ;;  %v2567_v60 = vld [vmem:[#allocation2 + $0xc] sm:$0xf]  ;;  %v137_v63 = vshrl.u32 %v119_v58, 16  ;;  %v140_v0 = vshll.u32 %v119_v58, 16 }
  0x16   :  { %v2571_v62 = vld [vmem:[#allocation2 + $0x8] sm:$0x1]  ;;  %v146_v1 = vshll.u32 %v2565_v59, 16  ;;  %v150_v2 = vshrl.u32 %v2565_v59, 16  ;;  %v2577_v4 = vld [vmem:[#allocation2 + $0x10] sm:$0xf]  ;;  %v1770_v39 = vcombine.low %v119_v58, %v2565_v59 }
  0x17   :  { %v156_v3 = vshll.u32 %v2571_v62, 16  ;;  %v2579_v5 = vld [vmem:[#allocation2 + $0x14] sm:$0x1]  ;;  %v139_v8 = vrot.slane %v137_v63, 4  ;;  %v142_v9 = vrot.slane %v140_v0, 5  ;;  %v161_v13 = vshrl.u32 %v2567_v60, 16 }
  0x18   :  { %v148_v10 = vrot.slane %v146_v1, 5  ;;  %v152_v11 = vrot.slane %v150_v2, 4  ;;  %v164_v14 = vshll.u32 %v2567_v60, 16  ;;  %v170_v15 = vshll.u32 %v2577_v4, 16  ;;  %v368_v44 = vld [vmem:[#allocation2] sm:$0xe] }
  0x19   :  { %v158_v12 = vrot.slane %v156_v3, 5  ;;  %v143_v16 = vor.u32 %v142_v9, %v139_v8  ;;  %v174_v18 = vshrl.u32 %v2577_v4, 16  ;;  %v180_v19 = vshll.u32 %v2579_v5, 16  ;;  %v369_v58 = vld [vmem:[#allocation2 + $0xc] sm:$0xe]  ;;  %v2382_v63 = vld [vmem:[%s3001_s1 + $0x58] sm:$0xff]  }
  0x1a   :  { %v153_v17 = vor.u32 %v152_v11, %v148_v10  ;;  %v163_v21 = vrot.slane %v161_v13, 4  ;;  %v166_v22 = vrot.slane %v164_v14, 5  ;;  %v172_v23 = vrot.slane %v170_v15, 5  ;;  %v504_v3 = vld [vmem:[%s3003_s4 + $0x30] sm:$0xff]  ;;  %v506_v8 = vld [vmem:[%s3003_s4 + $0x40] sm:$0xff]  ;;  %v507_v9 = vld [vmem:[%s3003_s4 + $0x48] sm:$0xff] }
  0x1b   :  { %v144_v24 = vrot.slane %v143_v16, 4  ;;  %v176_v26 = vrot.slane %v174_v18, 4  ;;  %v182_v32 = vrot.slane %v180_v19, 5  ;;  %v379_v43 = vrot.slane %v2565_v59, 5  ;;  %v508_v11 = vld [vmem:[%s3003_s4 + $0x50] sm:$0xff]  ;;  %v510_v14 = vld [vmem:[%s3003_s4 + $0x60] sm:$0xff] }
  0x1c   :  { %v154_v25 = vrot.slane %v153_v17, 4  ;;  %v167_v27 = vor.u32 %v166_v22, %v163_v21  ;;  %v382_v45 = vrot.slane %v2571_v62, 5  ;;  %v1778_v46 = vrot.slane %v368_v44, 9  ;;  %v511_v15 = vld [vmem:[%s3003_s4 + $0x68] sm:$0xff]  ;;  %v512_v16 = vld [vmem:[%s3003_s4 + $0x70] sm:$0xff]  ;;  %v513_v18 = vld [vmem:[%s3003_s4 + $0x78] sm:$0xff] }
  0x1d   :  { %v149_v28 = vsel %vm2592_vm11, %v144_v24, %v148_v10  ;;  %v177_v31 = vor.u32 %v176_v26, %v172_v23  ;;  %v381_v47 = vrot.slane %v379_v43, 4  ;;  %v1771_v52 = vcombine.low %v2567_v60, %v2577_v4 }
  0x1e   :  { %v159_v29 = vsel %vm2592_vm11, %v154_v25, %v158_v12  ;;  %v168_v34 = vrot.slane %v167_v27, 4  ;;  %v380_v50 = vsel %vm2623_vm15, %v1778_v46, %v379_v43  ;;  %v386_v56 = vrot.slane %v2577_v4, 5  ;;  %v505_v4 = vld [vmem:[%s3003_s4 + $0x38] sm:$0xff] }
  0x1f   :  { %v1762_v33 = vcombine.low %v149_v28, %v159_v29  ;;  %v178_v35 = vrot.slane %v177_v31, 4  ;;  %v383_v51 = vsel %vm2623_vm15, %v381_v47, %v382_v45  ;;  %v389_v59 = vrot.slane %v2579_v5, 5  ;;  %v509_v12 = vld [vmem:[%s3003_s4 + $0x58] sm:$0xff] }
  0x20   :  { %v173_v36 = vsel %vm2592_vm11, %v168_v34, %v172_v23  ;;  %v1788_v53 = vcombine.low %v380_v50, %v383_v51  ;;  %v1779_v60 = vrot.slane %v369_v58, 9  ;;  %v388_v62 = vrot.slane %v386_v56, 4 }
  0x21   :  { %2006 = vmatprep.mubr.msk.bf16.mxu0 %vm223_vm12, %v1762_v33  ;;  %v183_v37 = vsel %vm2592_vm11, %v178_v35, %v182_v32  ;;  %v2264_v5 = vpack.c.bf16 %v505_v4, %v504_v3  ;;  %v2267_v10 = vpack.c.bf16 %v507_v9, %v506_v8  ;;  %v2270_v13 = vpack.c.bf16 %v509_v12, %v508_v11  ;;  %v855_v4 = vld [vmem:[#allocation3] sm:$0x1]  ;;  %v865_v11 = vld [vmem:[#allocation3 + $0x14] sm:$0x1] }
  0x22   :  { %v1763_v40 = vcombine.low %v173_v36, %v183_v37  ;;  %v387_v0 = vsel %vm2623_vm15, %v1779_v60, %v386_v56  ;;  %v390_v1 = vsel %vm2623_vm15, %v388_v62, %v389_v59  ;;  %v2273_v17 = vpack.c.bf16 %v511_v15, %v510_v14  ;;  %v585_v36 = vld [vmem:[%s3004_s5] sm:$0xff]  ;;  %v2384_v14 = vld [vmem:[%s3005_s6 + $0x48] sm:$0xff]   ;;  %v2385_v15 = vld [vmem:[%s3005_s6 + $0x50] sm:$0xff]  }
  0x23   :  { %v1789_v2 = vcombine.low %v387_v0, %v390_v1  ;;  %2265 = vmatpush3.bf16.msra.mxu1 %v2264_v5  ;;  %v2415_v19 = vmov 0.0   ;;  %v2276_v21 = vpack.c.bf16 %v513_v18, %v512_v16  ;;  %v856_v8 = vsel %vm2740_vm5, 0, %v855_v4  ;;  %v2386_v16 = vld [vmem:[%s3005_s6 + $0x58] sm:$0xff]   ;;  %v2388_v18 = vld [vmem:[%s3005_s6 + $0x68] sm:$0xff]  }
  0x24   :  { %2007 = vmatmul.mubr.msk.bf16.vlgmr.msra.gmra.mrb[0].mxu0 %vm223_vm12, %v1763_v40  ;;  %2266 = vmatprep.subr.bf16.mxu1 %v2413_v7  ;;  %857 = vst [vmem:[#allocation3] sm:$0x1] %v856_v8 }
  0x25   :  { %2011 = vmatpush3.bf16.msra.mxu0 %v2528_v38  ;;  %2018 = vmatprep.mubr.msk.bf16.mxu0 %vm223_vm12, %v1770_v39  ;;  %v2376_v38 = vld [vmem:[%s3001_s1 + $0x18] sm:$0xff]  }
  0x26   :  { %2012 = vmatprep.subr.bf16.mxu0 %v2374_v41  ;;  %2066 = vmatprep.mubr.msk.f32.mxu1 %vm2414_vm1, %v2415_v19 }
  0x27   :  { %2268 = vmatpush3.bf16.msra.mxu1 %v2267_v10 }
  0x28   :  { %2269 = vmatprep.subr.bf16.mxu1 %v2413_v7 }
  0x29   :  { %2013 = vmatpush3.bf16.msra.mxu0 %v2374_v41 }
  0x2a   :  { %2014 = vmatprep.subr.bf16.mxu0 %v2375_v42 }
  0x2b   :  { %2271 = vmatpush3.bf16.msra.mxu1 %v2270_v13  ;;  %v922_v4 = vld [vmem:[#allocation3] sm:$0xf] }
  0x2c   :  { %2272 = vmatprep.subr.bf16.mxu1 %v2413_v7 }
  0x2d   :  { %2015 = vmatpush3.bf16.msra.mxu0 %v2375_v42 }
  0x2e   :  { %2016 = vmatprep.subr.bf16.mxu0 %v2376_v38 }
  0x2f   :  { %2274 = vmatpush3.bf16.msra.mxu1 %v2273_v17 }
  0x30   :  { %2275 = vmatprep.subr.bf16.mxu1 %v2413_v7 }
  0x31   :  { %2017 = vmatpush3.bf16.msra.mxu0 %v2376_v38 }
  0x32   :  { %2022 = vmatprep.subr.bf16.mxu0 %v2378_v49 }
  0x33   :  { %2277 = vmatpush3.bf16.msra.mxu1 %v2276_v21 }
  0x34   :  { %2019 = vmatmul.mubr.msk.bf16.vlgmr.msra.gmra.mrb[0].mxu0 %vm223_vm12, %v1771_v52  ;;  %2069 = vmatprep.subr.mxu1 %v2415_v19 }
  0x35   :  { %2023 = vmatpush3.bf16.msra.mxu0 %v2378_v49  ;;  %2030 = vmatprep.mubr.msk.bf16.mxu0 %vm223_vm12, %v1788_v53 }
  0x36   :  { %2024 = vmatprep.subr.bf16.mxu0 %v2380_v54 }
  0x39   :  { %2025 = vmatpush3.bf16.msra.mxu0 %v2380_v54 }
  0x3a   :  { %2026 = vmatprep.subr.bf16.mxu0 %v2381_v57 }
  0x3d   :  { %2027 = vmatpush3.bf16.msra.mxu0 %v2381_v57 }
  0x3e   :  { %2028 = vmatprep.subr.bf16.mxu0 %v2382_v63 }
  0x41   :  { %2029 = vmatpush3.bf16.msra.mxu0 %v2382_v63 }
  0x44   :  { %2031 = vmatmul.mubr.msk.bf16.vlgmr.msra.gmra.mrb[0].mxu0 %vm223_vm12, %v1789_v2  ;;  %v2383_v2 = vld [vmem:[%s3005_s6 + $0x40] sm:$0xff]  }
  0x45   :  { %2114 = vmatprep.subr.bf16.mxu0 %v2383_v2 }
  0x46   :  { %2115 = vmatpush3.bf16.msra.mxu0 %v2383_v2 }
  0x47   :  { %2116 = vmatprep.subr.bf16.mxu0 %v2384_v14 }
  0x4a   :  { %2117 = vmatpush3.bf16.msra.mxu0 %v2384_v14 }
  0x4b   :  { %2118 = vmatprep.subr.bf16.mxu0 %v2385_v15 }
  0x4e   :  { %2119 = vmatpush3.bf16.msra.mxu0 %v2385_v15 }
  0x4f   :  { %2120 = vmatprep.subr.bf16.mxu0 %v2386_v16 }
  0x52   :  { %2121 = vmatpush3.bf16.msra.mxu0 %v2386_v16 }
 0x117   :  { %v2032_v22 = vpop.f32.mrb[0].mxu0 }
 0x118   :  { %v470_v23 = vpop.f32.mrb[1].mxu0 }
 0x119   :  { %v2033_v24 = vpop.f32.mrb[2].mxu0 }
 0x11a   :  { %v473_v25 = vpop.f32.mrb[3].mxu0 }
 0x11b   :  { %v489_v26 = vadd.f32 %v473_v25, %v470_v23 }
 0x11d   :  { %v490_v27 = vadd.f32 %v2032_v22, %v489_v26  ;;  %v1394_v26 = vld [vmem:[%s3006_s9 + $0x10] sm:$0xff] }
 0x11f   :  { %v491_v28 = vadd.f32 %v2033_v24, %v490_v27 }
 0x121   :  { %v492_v29 = vrot.slane %v491_v28, 4 }
 0x123   :  { %v493_v31 = vadd.f32 %v492_v29, %v491_v28  ;;  %v1395_v28 = vld [vmem:[%s3006_s9 + $0x18] sm:$0xff] }
 0x124   :  { %v2791_v29 = vpack.c.bf16 %v1395_v28, %v1394_v26 }
 0x125   :  { %v494_v32 = vrot.slane %v493_v31, 2 }
 0x127   :  { %v495_v33 = vadd.f32 %v494_v32, %v493_v31  ;;  %v1396_v31 = vld [vmem:[%s3006_s9 + $0x20] sm:$0xff]  ;;  %v1397_v32 = vld [vmem:[%s3006_s9 + $0x28] sm:$0xff] }
 0x129   :  { %v496_v34 = vrot.slane %v495_v33, 1 }
 0x12b   :  { %v497_v35 = vadd.f32 %v496_v34, %v495_v33  ;;  %v2801_v34 = vpack.c.bf16 %v1397_v32, %v1396_v31 }
 0x12d   :  { %2067 = vmatmul.mubr.f32.vlgmr.msra.gmra.mrb[0].mxu1 %v497_v35 }
 0x12e   :  { %2070 = vmatpush3.msra.mxu1 %v585_v36  ;;  %2071 = vmatprep.mubr.msk.f32.mxu1 %vm2414_vm1, %v2415_v19 }
 0x12f   :  { %2278 = vmatprep.subr.bf16.mxu1 %v2413_v7 }
 0x200   :  { %v580_v37 = vpop.f32.mrb[0].mxu1 }
 0x201   :  { %v584_v39 = vmul.f32 0.001953125, %v580_v37  ;;  %v2068_v40 = vpop.f32.mrb[1].mxu1  ;;  %v752_v37 = vld [vmem:[%s3007_s2] sm:$0x1] }
 0x203   :  { %2072 = vmatmul.mubr.msk.f32.vlgmr.msra.gmra.mrb[2].mxu1 %vm586_vm2, %v584_v39 }
 0x204   :  { %2280 = vmatpush3.bf16.msra.mxu1 %v2557_v55  ;;  %2106 = vmatprep.mubr.msk.f32.mxu1 %vm2414_vm1, %v2415_v19  ;;  %v660_v55 = vlaneseq }
 0x205   :  { %2281 = vmatprep.subr.bf16.mxu1 %v2413_v7 }
 0x208   :  { %2283 = vmatpush3.bf16.msra.mxu1 %v2569_v61  ;;  %v661_v61 = vshrl.u32 %v660_v55, 7 }
 0x209   :  { %2284 = vmatprep.subr.bf16.mxu1 %v2413_v7 }
 0x20c   :  { %2286 = vmatpush3.bf16.msra.mxu1 %v2582_v6  ;;  %v2711_v6 = vsub.s32 0, %v661_v61  ;;  %v1798_v61 = vld [vmem:[%s3008_s3] ss:$0 sm:$0xff] }
 0x20d   :  { %2287 = vmatprep.subr.bf16.mxu1 %v2413_v7 }
 0x210   :  { %2289 = vmatpush3.bf16.msra.mxu1 %v2264_v5  ;;  %v858_v5 = vld [vmem:[#allocation3 + $0xc] sm:$0x1] }
 0x211   :  { %2290 = vmatprep.subr.bf16.mxu1 %v2413_v7  ;;  %v859_v9 = vsel %vm2740_vm5, 0, %v858_v5 }
 0x212   :  { %860 = vst [vmem:[#allocation3 + $0xc] sm:$0x1] %v859_v9 }
 0x214   :  { %2292 = vmatpush3.bf16.msra.mxu1 %v2267_v10  ;;  %v862_v10 = vld [vmem:[#allocation3 + $0x8] sm:$0x1] }
 0x215   :  { %2293 = vmatprep.subr.bf16.mxu1 %v2413_v7  ;;  %v863_v12 = vsel %vm861_vm6, 0, %v862_v10 }
 0x216   :  { %864 = vst [vmem:[#allocation3 + $0x8] sm:$0x1] %v863_v12 }
 0x218   :  { %2295 = vmatpush3.bf16.msra.mxu1 %v2270_v13  ;;  %v866_v13 = vsel %vm861_vm6, 0, %v865_v11 }
 0x219   :  { %2296 = vmatprep.subr.bf16.mxu1 %v2413_v7  ;;  %867 = vst [vmem:[#allocation3 + $0x14] sm:$0x1] %v866_v13 }
 0x21c   :  { %2298 = vmatpush3.bf16.msra.mxu1 %v2273_v17  ;;  %v2387_v17 = vld [vmem:[%s3005_s6 + $0x60] sm:$0xff]  }
 0x21d   :  { %2299 = vmatprep.subr.bf16.mxu1 %v2413_v7  ;;  %2122 = vmatprep.subr.bf16.mxu0 %v2387_v17  ;;  %v926_v12 = vld [vmem:[#allocation3 + $0x8] sm:$0x1] }
 0x21e   :  { %2123 = vmatpush3.bf16.msra.mxu0 %v2387_v17  ;;  %v929_v17 = vld [vmem:[#allocation3 + $0xc] sm:$0xf] }
 0x21f   :  { %2124 = vmatprep.subr.bf16.mxu0 %v2388_v18 }
 0x220   :  { %2301 = vmatpush3.bf16.msra.mxu1 %v2276_v21  ;;  %v2389_v21 = vld [vmem:[%s3005_s6 + $0x70] sm:$0xff]  }
 0x221   :  { %2109 = vmatprep.subr.mxu1 %v2415_v19 }
 0x222   :  { %2125 = vmatpush3.bf16.msra.mxu0 %v2388_v18  ;;  %v933_v18 = vld [vmem:[#allocation3 + $0x14] sm:$0x1] }
 0x223   :  { %2126 = vmatprep.subr.bf16.mxu0 %v2389_v21 }
 0x226   :  { %2127 = vmatpush3.bf16.msra.mxu0 %v2389_v21 }
 0x2d6   :  { %v656_v41 = vpop.f32.mrb[2].mxu1 }
 0x2d7   :  { %v663_v42 = vrot.slane %v656_v41, %v2711_v6  ;;  %v2073_v43 = vpop.f32.mrb[3].mxu1 }
 0x2d9   :  { %v2714_v44 = vsub.f32 %v470_v23, %v663_v42  ;;  %v2716_v45 = vsub.f32 %v473_v25, %v663_v42  ;;  %v2718_v38 = vsub.f32 %v2032_v22, %v663_v42  ;;  %v2720_v46 = vsub.f32 %v2033_v24, %v663_v42  ;;  %v2390_v22 = vld [vmem:[%s3005_s6 + $0x78] sm:$0xff]   ;;  %v2773_v23 = vld [vmem:[%s3005_s6] sm:$0xff]   ;;  %v1393_v25 = vld [vmem:[%s3006_s9 + $0x8] sm:$0xff] }
 0x2da   :  { %2128 = vmatprep.subr.bf16.mxu0 %v2390_v22  ;;  %v1392_v24 = vld [vmem:[%s3006_s9] sm:$0xff] }
 0x2db   :  { %v668_v47 = vmul.f32 %v2714_v44, %v2714_v44  ;;  %v669_v49 = vmul.f32 %v2716_v45, %v2716_v45  ;;  %v670_v50 = vmul.f32 %v2718_v38, %v2718_v38  ;;  %v671_v52 = vmul.f32 %v2720_v46, %v2720_v46  ;;  %2129 = vmatpush3.bf16.msra.mxu0 %v2390_v22 }
 0x2dc   :  { %2134 = vmatprep.subr.bf16.mxu0 %v2773_v23  ;;  %v2785_v27 = vpack.c.bf16 %v1393_v25, %v1392_v24 }
 0x2dd   :  { %v672_v51 = vadd.f32 %v669_v49, %v668_v47 }
 0x2df   :  { %v673_v53 = vadd.f32 %v672_v51, %v670_v50 }
 0x2e1   :  { %v674_v54 = vadd.f32 %v673_v53, %v671_v52 }
 0x2e3   :  { %v675_v56 = vrot.slane %v674_v54, 4 }
 0x2e5   :  { %v676_v57 = vadd.f32 %v675_v56, %v674_v54 }
 0x2e7   :  { %v677_v58 = vrot.slane %v676_v57, 2 }
 0x2e9   :  { %v678_v59 = vadd.f32 %v677_v58, %v676_v57 }
 0x2eb   :  { %v679_v60 = vrot.slane %v678_v59, 1 }
 0x2ed   :  { %v680_v62 = vadd.f32 %v679_v60, %v678_v59 }
 0x2ef   :  { %2107 = vmatmul.mubr.f32.vlgmr.msra.gmra.mrb[4].mxu1 %v680_v62 }
 0x2f0   :  { %2110 = vmatpush3.msra.mxu1 %v585_v36  ;;  %2111 = vmatprep.mubr.msk.f32.mxu1 %vm2414_vm1, %v2415_v19 }
 0x2f1   :  { %2302 = vmatprep.subr.bf16.mxu1 %v2413_v7 }
 0x3c2   :  { %v747_v63 = vpop.f32.mrb[4].mxu1 }
 0x3c3   :  { %v751_v0 = vmul.f32 0.001953125, %v747_v63  ;;  %v2108_v1 = vpop.f32.mrb[5].mxu1 }
 0x3c5   :  { %2112 = vmatmul.mubr.msk.f32.vlgmr.msra.gmra.mrb[6].mxu1 %vm586_vm2, %v751_v0 }
 0x3c6   :  { %2206 = vmatprep.mubr.msk.f32.mxu1 %vm2414_vm1, %v2415_v19  ;;  %2304 = vmatpush3.bf16.msra.mxu1 %v2785_v27 }
 0x3c7   :  { %2305 = vmatprep.subr.bf16.mxu1 %v2413_v7 }
 0x3ca   :  { %2307 = vmatpush3.bf16.msra.mxu1 %v2791_v29 }
 0x3cb   :  { %2308 = vmatprep.subr.bf16.mxu1 %v2413_v7 }
 0x3ce   :  { %2310 = vmatpush3.bf16.msra.mxu1 %v2801_v34 }
 0x3cf   :  { %2311 = vmatprep.subr.bf16.mxu1 %v2413_v7 }
 0x498   :  { %v822_v33 = vpop.f32.mrb[6].mxu1 }
 0x499   :  { %v823_v35 = vadd.f32 1e-05, %v822_v33  ;;  %v2113_v36 = vpop.f32.mrb[7].mxu1 }
 0x49b   :  { %2409 = vrsqrt.f32 %v823_v35 }
 0x4a5   :  { %v2410_v39 = vpop.eup %2409 }
 0x4a6   :  { %v827_v40 = vmul.f32 %v2410_v39, %v752_v37 }
 0x4a8   :  { %v832_v55 = vrot.slane %v827_v40, %v2711_v6 }
 0x4aa   :  { %v834_v41 = vmul.f32 %v832_v55, %v2714_v44  ;;  %v835_v42 = vmul.f32 %v832_v55, %v2716_v45  ;;  %v836_v43 = vmul.f32 %v832_v55, %v2718_v38  ;;  %v837_v47 = vmul.f32 %v832_v55, %v2720_v46 }
 0x4ac   :  { %v845_v49 = vadd.f32 %v1798_v61, %v834_v41  ;;  %v846_v50 = vadd.f32 %v1798_v61, %v835_v42  ;;  %v847_v51 = vadd.f32 %v1798_v61, %v836_v43  ;;  %v848_v52 = vadd.f32 %v1798_v61, %v837_v47 }
 0x4ae   :  { %v849_v53 = vmax.f32 %v845_v49, 0.0  ;;  %v850_v54 = vmax.f32 %v846_v50, 0.0  ;;  %v851_v56 = vmax.f32 %v847_v51, 0.0  ;;  %v852_v57 = vmax.f32 %v848_v52, 0.0 }
 0x4b0   :  { %v1870_v58 = vpack.c.bf16 %v849_v53, %v849_v53  ;;  %v1871_v59 = vpack.c.bf16 %v850_v54, %v850_v54  ;;  %v1872_v60 = vpack.c.bf16 %v851_v56, %v851_v56  ;;  %v1873_v62 = vpack.c.bf16 %v852_v57, %v852_v57 }
 0x4b2   :  { %v881_v63 = vshrl.u32 %v1870_v58, 16  ;;  %v889_v44 = vshrl.u32 %v1871_v59, 16  ;;  %v898_v45 = vshrl.u32 %v1872_v60, 16  ;;  %v906_v0 = vshrl.u32 %v1873_v62, 16 }
 0x4b3   :  { %v884_v1 = vshll.u32 %v1870_v58, 16  ;;  %v892_v2 = vshll.u32 %v1871_v59, 16  ;;  %v901_v8 = vshll.u32 %v1872_v60, 16  ;;  %v909_v10 = vshll.u32 %v1873_v62, 16 }
 0x4b4   :  { %v883_v38 = vrot.slane %v881_v63, 7  ;;  %v891_v46 = vrot.slane %v889_v44, 7  ;;  %v900_v5 = vrot.slane %v898_v45, 7  ;;  %v908_v9 = vrot.slane %v906_v0, 7 }
 0x4b6   :  { %v886_v13 = vor.u32 %v884_v1, %v883_v38  ;;  %v887_v14 = vrot.slane %v883_v38, 4  ;;  %v894_v15 = vor.u32 %v892_v2, %v891_v46  ;;  %v896_v16 = vrot.slane %v891_v46, 4 }
 0x4b7   :  { %v903_v21 = vor.u32 %v901_v8, %v900_v5  ;;  %v904_v22 = vrot.slane %v900_v5, 4  ;;  %v911_v24 = vor.u32 %v909_v10, %v908_v9  ;;  %v913_v25 = vrot.slane %v908_v9, 4 }
 0x4b8   :  { %v895_v26 = vsel %vm2521_vm8, %v887_v14, %v894_v15  ;;  %v923_v28 = vsel %vm2818_vm7, %v886_v13, %v922_v4  ;;  %v927_v31 = vsel %vm2740_vm5, %v896_v16, %v926_v12 }
 0x4b9   :  { %v912_v32 = vsel %vm2521_vm8, %v904_v22, %v911_v24  ;;  %924 = vst [vmem:[#allocation3] sm:$0xf] %v923_v28  ;;  %925 = vst [vmem:[#allocation3 + $0x4] sm:$0xf] %v895_v26  ;;  %v930_v33 = vsel %vm2818_vm7, %v903_v21, %v929_v17  ;;  %v934_v35 = vsel %vm2740_vm5, %v913_v25, %v933_v18  ;;  %v2393_v24 = vld [vmem:[%s3005_s6 + $0x8] sm:$0xff]   ;;  %v2395_v28 = vld [vmem:[%s3005_s6 + $0x18] sm:$0xff]  }
 0x4ba   :  { %928 = vst [vmem:[#allocation3 + $0x8] sm:$0x1] %v927_v31  ;;  %931 = vst [vmem:[#allocation3 + $0xc] sm:$0xf] %v930_v33  ;;  %v2396_v31 = vld [vmem:[%s3005_s6 + $0x20] sm:$0xff]  }
 0x4bb   :  { %932 = vst [vmem:[#allocation3 + $0x10] sm:$0xf] %v912_v32  ;;  %935 = vst [vmem:[#allocation3 + $0x14] sm:$0x1] %v934_v35  ;;  %v2398_v32 = vld [vmem:[%s3005_s6 + $0x30] sm:$0xff]   ;;  %v2399_v35 = vld [vmem:[%s3005_s6 + $0x38] sm:$0xff]  }
 0x4c0   :  { %v936_v36 = vld [vmem:[#allocation3] sm:$0xf]  ;;  %v2834_v37 = vld [vmem:[#allocation3 + $0x4] sm:$0xf] }
 0x4c1   :  { %v2836_v39 = vld [vmem:[#allocation3 + $0x8] sm:$0x1]  ;;  %v959_v40 = vshrl.u32 %v936_v36, 16  ;;  %v962_v30 = vshll.u32 %v936_v36, 16  ;;  %v968_v55 = vshll.u32 %v2834_v37, 16  ;;  %v972_v61 = vshrl.u32 %v2834_v37, 16 }
 0x4c2   :  { %v2840_v41 = vld [vmem:[#allocation3 + $0xc] sm:$0xf]  ;;  %v978_v42 = vshll.u32 %v2836_v39, 16  ;;  %v2843_v3 = vld [vmem:[#allocation3 + $0x10] sm:$0xf]  ;;  %v1829_v26 = vcombine.low %v936_v36, %v2834_v37  ;;  %v1245_v33 = vrot.slane %v2834_v37, 5 }
 0x4c3   :  { %v983_v43 = vshrl.u32 %v2840_v41, 16  ;;  %v961_v47 = vrot.slane %v959_v40, 4  ;;  %v964_v49 = vrot.slane %v962_v30, 5  ;;  %v970_v50 = vrot.slane %v968_v55, 5  ;;  %v957_v52 = vld [vmem:[#allocation3 + $0x14] sm:$0x1] }
 0x4c4   :  { %v974_v51 = vrot.slane %v972_v61, 4  ;;  %v986_v54 = vshll.u32 %v2840_v41, 16  ;;  %v992_v56 = vshll.u32 %v2843_v3, 16  ;;  %v996_v59 = vshrl.u32 %v2843_v3, 16  ;;  %v1238_v60 = vld [vmem:[#allocation3 + $0xc] sm:$0xe] }
 0x4c5   :  { %v985_v53 = vrot.slane %v983_v43, 4  ;;  %v965_v57 = vor.u32 %v964_v49, %v961_v47  ;;  %v980_v62 = vrot.slane %v978_v42, 5  ;;  %v1002_v1 = vshll.u32 %v957_v52, 16  ;;  %v1237_v36 = vld [vmem:[#allocation3] sm:$0xe]  ;;  %v2401_v30 = vld [vmem:[%s3005_s6 + $0x80] sm:$0xff]  }
 0x4c6   :  { %v975_v58 = vor.u32 %v974_v51, %v970_v50  ;;  %v988_v63 = vrot.slane %v986_v54, 5  ;;  %v994_v44 = vrot.slane %v992_v56, 5  ;;  %v998_v38 = vrot.slane %v996_v59, 4  ;;  %v2402_v47 = vld [vmem:[%s3005_s6 + $0x88] sm:$0xff]   ;;  %v2408_v51 = vld [vmem:[%s3005_s6 + $0xb8] sm:$0xff]   ;;  %v1400_v56 = vld [vmem:[%s3006_s9 + $0x40] sm:$0xff] }
 0x4c7   :  { %v966_v45 = vrot.slane %v965_v57, 4  ;;  %v1840_v2 = vrot.slane %v1238_v60, 9  ;;  %v1252_v9 = vrot.slane %v2843_v3, 5  ;;  %v1004_v13 = vrot.slane %v1002_v1, 5  ;;  %v1401_v57 = vld [vmem:[%s3006_s9 + $0x48] sm:$0xff]  ;;  %v1402_v59 = vld [vmem:[%s3006_s9 + $0x50] sm:$0xff] }
 0x4c8   :  { %v976_v0 = vrot.slane %v975_v58, 4  ;;  %v989_v46 = vor.u32 %v988_v63, %v985_v53  ;;  %v999_v8 = vor.u32 %v998_v38, %v994_v44  ;;  %v1255_v15 = vrot.slane %v957_v52, 5  ;;  %v1398_v52 = vld [vmem:[%s3006_s9 + $0x30] sm:$0xff]  ;;  %v1399_v53 = vld [vmem:[%s3006_s9 + $0x38] sm:$0xff]  ;;  %v1404_v63 = vld [vmem:[%s3006_s9 + $0x60] sm:$0xff] }
 0x4c9   :  { %v971_v4 = vsel %vm2592_vm11, %v966_v45, %v970_v50  ;;  %v1254_v14 = vrot.slane %v1252_v9, 4  ;;  %v2860_v18 = vsel %vm2623_vm15, %v1840_v2, %v1252_v9  ;;  %v1247_v40 = vrot.slane %v1245_v33, 4  ;;  %v2407_v50 = vld [vmem:[%s3005_s6 + $0xb0] sm:$0xff]   ;;  %v1403_v60 = vld [vmem:[%s3006_s9 + $0x58] sm:$0xff] }
 0x4ca   :  { %v981_v5 = vsel %vm2592_vm11, %v976_v0, %v980_v62  ;;  %v990_v11 = vrot.slane %v989_v46, 4  ;;  %v1000_v12 = vrot.slane %v999_v8, 4  ;;  %v1839_v55 = vrot.slane %v1237_v36, 9  ;;  %v1406_v0 = vld [vmem:[%s3006_s9 + $0x70] sm:$0xff]  ;;  %v1407_v38 = vld [vmem:[%s3006_s9 + $0x78] sm:$0xff] }
 0x4cb   :  { %v1819_v10 = vcombine.low %v971_v4, %v981_v5  ;;  %v2864_v21 = vsel %vm2623_vm15, %v1254_v14, %v1255_v15  ;;  %v1248_v61 = vrot.slane %v2836_v39, 5  ;;  %v1830_v42 = vcombine.low %v2840_v41, %v2843_v3  ;;  %v2403_v39 = vld [vmem:[%s3005_s6 + $0x90] sm:$0xff]   ;;  %v2405_v41 = vld [vmem:[%s3005_s6 + $0xa0] sm:$0xff]   ;;  %v2406_v3 = vld [vmem:[%s3005_s6 + $0xa8] sm:$0xff]  }
 0x4cc   :  { %v995_v16 = vsel %vm2592_vm11, %v990_v11, %v994_v44  ;;  %v1005_v17 = vsel %vm2592_vm11, %v1000_v12, %v1004_v13  ;;  %v1858_v25 = vcombine.low %v2860_v18, %v2864_v21  ;;  %v1246_v43 = vsel %vm2623_vm15, %v1839_v55, %v1245_v33  ;;  %v1405_v44 = vld [vmem:[%s3006_s9 + $0x68] sm:$0xff] }
 0x4cd   :  { %2130 = vmatprep.mubr.bf16.mxu0 %v1819_v10  ;;  %v1820_v22 = vcombine.low %v995_v16, %v1005_v17  ;;  %v1249_v37 = vsel %vm2623_vm15, %v1247_v40, %v1248_v61  ;;  %v2312_v54 = vpack.c.bf16 %v1399_v53, %v1398_v52  ;;  %v2315_v58 = vpack.c.bf16 %v1401_v57, %v1400_v56  ;;  %v1479_v17 = vld [vmem:[%s3009_s10] sm:$0xff] }
 0x4ce   :  { %v1857_v49 = vcombine.low %v1246_v43, %v1249_v37  ;;  %v2318_v62 = vpack.c.bf16 %v1403_v60, %v1402_v59  ;;  %v2321_v45 = vpack.c.bf16 %v1405_v44, %v1404_v63  ;;  %v2324_v1 = vpack.c.bf16 %v1407_v38, %v1406_v0 }
 0x4cf   :  { %2131 = vmatmul.mubr.bf16.vlgmr.msra.gmra.mrb[4].mxu0 %v1820_v22  ;;  %2313 = vmatpush3.bf16.msra.mxu1 %v2312_v54 }
 0x4d0   :  { %2135 = vmatpush3.bf16.msra.mxu0 %v2773_v23  ;;  %2150 = vmatprep.mubr.bf16.mxu0 %v1829_v26  ;;  %v2397_v23 = vld [vmem:[%s3005_s6 + $0x28] sm:$0xff]  }
 0x4d1   :  { %2136 = vmatprep.subr.bf16.mxu0 %v2393_v24  ;;  %2314 = vmatprep.subr.bf16.mxu1 %v2413_v7 }
 0x4d3   :  { %2316 = vmatpush3.bf16.msra.mxu1 %v2315_v58 }
 0x4d4   :  { %2137 = vmatpush3.bf16.msra.mxu0 %v2393_v24  ;;  %2317 = vmatprep.subr.bf16.mxu1 %v2413_v7 }
 0x4d5   :  { %2138 = vmatprep.subr.bf16.mxu0 %v2394_v20 }
 0x4d7   :  { %2319 = vmatpush3.bf16.msra.mxu1 %v2318_v62 }
 0x4d8   :  { %2139 = vmatpush3.bf16.msra.mxu0 %v2394_v20  ;;  %2320 = vmatprep.subr.bf16.mxu1 %v2413_v7 }
 0x4d9   :  { %2140 = vmatprep.subr.bf16.mxu0 %v2395_v28 }
 0x4db   :  { %2322 = vmatpush3.bf16.msra.mxu1 %v2321_v45 }
 0x4dc   :  { %2141 = vmatpush3.bf16.msra.mxu0 %v2395_v28  ;;  %2323 = vmatprep.subr.bf16.mxu1 %v2413_v7 }
 0x4dd   :  { %2142 = vmatprep.subr.bf16.mxu0 %v2396_v31 }
 0x4df   :  { %2325 = vmatpush3.bf16.msra.mxu1 %v2324_v1 }
 0x4e0   :  { %2143 = vmatpush3.bf16.msra.mxu0 %v2396_v31  ;;  %2209 = vmatprep.subr.mxu1 %v2415_v19 }
 0x4e1   :  { %2144 = vmatprep.subr.bf16.mxu0 %v2397_v23 }
 0x4e4   :  { %2145 = vmatpush3.bf16.msra.mxu0 %v2397_v23 }
 0x4e5   :  { %2146 = vmatprep.subr.bf16.mxu0 %v2398_v32 }
 0x4e8   :  { %2147 = vmatpush3.bf16.msra.mxu0 %v2398_v32 }
 0x4e9   :  { %2148 = vmatprep.subr.bf16.mxu0 %v2399_v35 }
 0x4ec   :  { %2149 = vmatpush3.bf16.msra.mxu0 %v2399_v35 }
 0x4ed   :  { %2154 = vmatprep.subr.bf16.mxu0 %v2401_v30 }
 0x4ef   :  { %2151 = vmatmul.mubr.bf16.vlgmr.msra.gmra.mrb[4].mxu0 %v1830_v42 }
 0x4f0   :  { %2155 = vmatpush3.bf16.msra.mxu0 %v2401_v30  ;;  %2170 = vmatprep.mubr.bf16.mxu0 %v1857_v49 }
 0x4f1   :  { %2156 = vmatprep.subr.bf16.mxu0 %v2402_v47 }
 0x4f4   :  { %2157 = vmatpush3.bf16.msra.mxu0 %v2402_v47 }
 0x4f5   :  { %2158 = vmatprep.subr.bf16.mxu0 %v2403_v39 }
 0x4f8   :  { %2159 = vmatpush3.bf16.msra.mxu0 %v2403_v39 }
 0x4f9   :  { %2160 = vmatprep.subr.bf16.mxu0 %v2404_v48 }
 0x4fc   :  { %2161 = vmatpush3.bf16.msra.mxu0 %v2404_v48 }
 0x4fd   :  { %2162 = vmatprep.subr.bf16.mxu0 %v2405_v41 }
 0x500   :  { %2163 = vmatpush3.bf16.msra.mxu0 %v2405_v41  ;;  %v1645_v41 = vld [vmem:[%s3010_s7] sm:$0x1] }
 0x501   :  { %2164 = vmatprep.subr.bf16.mxu0 %v2406_v3 }
 0x504   :  { %2165 = vmatpush3.bf16.msra.mxu0 %v2406_v3 }
 0x505   :  { %2166 = vmatprep.subr.bf16.mxu0 %v2407_v50 }
 0x508   :  { %2167 = vmatpush3.bf16.msra.mxu0 %v2407_v50 }
 0x509   :  { %2168 = vmatprep.subr.bf16.mxu0 %v2408_v51 }
 0x50c   :  { %2169 = vmatpush3.bf16.msra.mxu0 %v2408_v51 }
 0x50f   :  { %2171 = vmatmul.mubr.bf16.vlgmr.msra.gmra.mrb[4].mxu0 %v1858_v25 }
 0x5e2   :  { %v2172_v46 = vpop.f32.mrb[4].mxu0 }
 0x5e3   :  { %v1364_v2 = vpop.f32.mrb[5].mxu0 }
 0x5e4   :  { %v2173_v4 = vpop.f32.mrb[6].mxu0 }
 0x5e5   :  { %v1367_v5 = vpop.f32.mrb[7].mxu0 }
 0x5e6   :  { %v1383_v8 = vadd.f32 %v1367_v5, %v1364_v2 }
 0x5e8   :  { %v1384_v9 = vadd.f32 %v2172_v46, %v1383_v8 }
 0x5ea   :  { %v1385_v10 = vadd.f32 %v2173_v4, %v1384_v9 }
 0x5ec   :  { %v1386_v11 = vrot.slane %v1385_v10, 4 }
 0x5ee   :  { %v1387_v12 = vadd.f32 %v1386_v11, %v1385_v10 }
 0x5f0   :  { %v1388_v13 = vrot.slane %v1387_v12, 2 }
 0x5f2   :  { %v1389_v14 = vadd.f32 %v1388_v13, %v1387_v12 }
 0x5f4   :  { %v1390_v15 = vrot.slane %v1389_v14, 1 }
 0x5f6   :  { %v1391_v16 = vadd.f32 %v1390_v15, %v1389_v14 }
 0x5f8   :  { %2207 = vmatmul.mubr.f32.vlgmr.msra.gmra.mrb[8].mxu1 %v1391_v16 }
 0x5f9   :  { %2210 = vmatpush3.msra.mxu1 %v1479_v17  ;;  %2211 = vmatprep.mubr.msk.f32.mxu1 %vm2414_vm1, %v2415_v19 }
 0x5fa   :  { %2326 = vmatprep.subr.bf16.mxu1 %v2413_v7 }
 0x6cb   :  { %v1474_v18 = vpop.f32.mrb[8].mxu1 }
 0x6cc   :  { %v1478_v21 = vmul.f32 0.001953125, %v1474_v18  ;;  %v2208_v22 = vpop.f32.mrb[9].mxu1 }
 0x6ce   :  { %2212 = vmatmul.mubr.msk.f32.vlgmr.msra.gmra.mrb[10].mxu1 %vm586_vm2, %v1478_v21 }
 0x6cf   :  { %2328 = vmatpush3.bf16.msra.mxu1 %v2785_v27  ;;  %2246 = vmatprep.mubr.msk.f32.mxu1 %vm2414_vm1, %v2415_v19 }
 0x6d0   :  { %2329 = vmatprep.subr.bf16.mxu1 %v2413_v7 }
 0x6d3   :  { %2331 = vmatpush3.bf16.msra.mxu1 %v2791_v29 }
 0x6d4   :  { %2332 = vmatprep.subr.bf16.mxu1 %v2413_v7 }
 0x6d7   :  { %2334 = vmatpush3.bf16.msra.mxu1 %v2801_v34 }
 0x6d8   :  { %2335 = vmatprep.subr.bf16.mxu1 %v2413_v7 }
 0x6db   :  { %2337 = vmatpush3.bf16.msra.mxu1 %v2312_v54 }
 0x6dc   :  { %2338 = vmatprep.subr.bf16.mxu1 %v2413_v7 }
 0x6df   :  { %2340 = vmatpush3.bf16.msra.mxu1 %v2315_v58 }
 0x6e0   :  { %2341 = vmatprep.subr.bf16.mxu1 %v2413_v7 }
 0x6e3   :  { %2343 = vmatpush3.bf16.msra.mxu1 %v2318_v62 }
 0x6e4   :  { %2344 = vmatprep.subr.bf16.mxu1 %v2413_v7 }
 0x6e7   :  { %2346 = vmatpush3.bf16.msra.mxu1 %v2321_v45 }
 0x6e8   :  { %2347 = vmatprep.subr.bf16.mxu1 %v2413_v7 }
 0x6eb   :  { %2349 = vmatpush3.bf16.msra.mxu1 %v2324_v1 }
 0x6ec   :  { %2249 = vmatprep.subr.mxu1 %v2415_v19 }
 0x7a1   :  { %v1549_v27 = vpop.f32.mrb[10].mxu1 }
 0x7a2   :  { %v1556_v29 = vrot.slane %v1549_v27, %v2711_v6  ;;  %v2213_v34 = vpop.f32.mrb[11].mxu1 }
 0x7a4   :  { %v1557_v24 = vsub.f32 %v1364_v2, %v1556_v29  ;;  %v1558_v25 = vsub.f32 %v1367_v5, %v1556_v29  ;;  %v1559_v26 = vsub.f32 %v2172_v46, %v1556_v29  ;;  %v1560_v20 = vsub.f32 %v2173_v4, %v1556_v29 }
 0x7a6   :  { %v1561_v28 = vmul.f32 %v1557_v24, %v1557_v24  ;;  %v1562_v31 = vmul.f32 %v1558_v25, %v1558_v25  ;;  %v1563_v23 = vmul.f32 %v1559_v26, %v1559_v26  ;;  %v1564_v33 = vmul.f32 %v1560_v20, %v1560_v20 }
 0x7a8   :  { %v1565_v32 = vadd.f32 %v1562_v31, %v1561_v28 }
 0x7aa   :  { %v1566_v35 = vadd.f32 %v1565_v32, %v1563_v23 }
 0x7ac   :  { %v1567_v36 = vadd.f32 %v1566_v35, %v1564_v33 }
 0x7ae   :  { %v1568_v40 = vrot.slane %v1567_v36, 4 }
 0x7b0   :  { %v1569_v7 = vadd.f32 %v1568_v40, %v1567_v36 }
 0x7b2   :  { %v1570_v30 = vrot.slane %v1569_v7, 2 }
 0x7b4   :  { %v1571_v55 = vadd.f32 %v1570_v30, %v1569_v7 }
 0x7b6   :  { %v1572_v61 = vrot.slane %v1571_v55, 1 }
 0x7b8   :  { %v1573_v37 = vadd.f32 %v1572_v61, %v1571_v55 }
 0x7ba   :  { %2247 = vmatmul.mubr.f32.vlgmr.msra.gmra.mrb[12].mxu1 %v1573_v37 }
 0x7bb   :  { %2250 = vmatpush3.msra.mxu1 %v1479_v17  ;;  %2251 = vmatprep.mubr.msk.f32.mxu1 %vm2414_vm1, %v2415_v19  ;;  %v1869_v19 = vld [vmem:[%s3011_s8] ss:$0 sm:$0xff] }
 0x88d   :  { %v1640_v42 = vpop.f32.mrb[12].mxu1 }
 0x88e   :  { %v1644_v43 = vmul.f32 0.001953125, %v1640_v42  ;;  %v2248_v47 = vpop.f32.mrb[13].mxu1 }
 0x890   :  { %2252 = vmatmul.mubr.msk.f32.vlgmr.msra.gmra.mrb[14].mxu1 %vm586_vm2, %v1644_v43 }
 0x963   :  { %v1715_v49 = vpop.f32.mrb[14].mxu1 }
 0x964   :  { %v1716_v39 = vadd.f32 1e-05, %v1715_v49  ;;  %v2253_v48 = vpop.f32.mrb[15].mxu1 }
 0x966   :  { %2411 = vrsqrt.f32 %v1716_v39 }
 0x970   :  { %v2412_v3 = vpop.eup %2411 }
 0x971   :  { %v1720_v50 = vmul.f32 %v2412_v3, %v1645_v41 }
 0x973   :  { %v1725_v51 = vrot.slane %v1720_v50, %v2711_v6 }
 0x975   :  { %v1727_v52 = vmul.f32 %v1725_v51, %v1557_v24  ;;  %v1728_v53 = vmul.f32 %v1725_v51, %v1558_v25  ;;  %v1729_v54 = vmul.f32 %v1725_v51, %v1559_v26  ;;  %v1730_v56 = vmul.f32 %v1725_v51, %v1560_v20 }
 0x977   :  { %v1738_v57 = vadd.f32 %v1869_v19, %v1727_v52  ;;  %v1739_v58 = vadd.f32 %v1869_v19, %v1728_v53  ;;  %v1740_v59 = vadd.f32 %v1869_v19, %v1729_v54  ;;  %v1741_v60 = vadd.f32 %v1869_v19, %v1730_v56 }
 0x979   :  { %v1742_v62 = vmax.f32 %v1738_v57, 0.0  ;;  %v1743_v63 = vmax.f32 %v1739_v58, 0.0  ;;  %v1744_v44 = vmax.f32 %v1740_v59, 0.0  ;;  %v1745_v45 = vmax.f32 %v1741_v60, 0.0 }
 0x97b   :  { %1746 = vst [vmem:[%s3012_s11] sm:$0xff] %v1742_v62  ;;  %1747 = vst [vmem:[%s3012_s11 + $0x8] sm:$0xff] %v1743_v63 }
 0x97c   :  { %1748 = vst [vmem:[%s3012_s11 + $0x10] sm:$0xff] %v1744_v44  ;;  %1749 = vst [vmem:[%s3012_s11 + $0x18] sm:$0xff] %v1745_v45 }

</bundles_post_ra>
